<compile_context>
chip_gen: v7x
topology: tpu7x:2x2x1
jax: 0.10.0
libtpu: 0.0.40
codegen_flags: <defaults>
</compile_context>

<pallas_src>
import jax
import jax.numpy as jnp
from jax.experimental import pallas as pl
from jax.experimental.pallas import tpu as pltpu


def _round_up(x, m):
    return ((x + m - 1) // m) * m


def _baseline_kernel(ids_ref, emb_ref, mask_ref, out_ref):
    # ids_ref  : (TB, S)      int32    — one batch block of token ids
    # emb_ref  : (V_pad, E)   float32  — full table, VMEM-resident across grid
    # mask_ref : (V_pad, E)   bfloat16 — precomputed (emb != 1) mask, resident
    # out_ref  : (TB, E)      float32
    TB, S = ids_ref.shape
    V, E = emb_ref.shape

    ids = ids_ref[...]
    emb = emb_ref[...]
    mask = mask_ref[...]

    # Occupancy matrix counts[b, v] = #{ s : ids[b, s] == v }, built from
    # vectorized (TB, sc, V) one-hot chunks.  Chunking bounds the 3-D
    # intermediate to ~2 MiB of VMEM regardless of TB / S / V_pad.
    s_chunk = max(1, min(S, (2 * 1024 * 1024) // max(1, TB * V * 4)))
    counts = jnp.zeros((TB, V), jnp.float32)
    for s0 in range(0, S, s_chunk):
        sc = min(s_chunk, S - s0)
        blk = ids[:, s0:s0 + sc]                                       # (TB, sc)
        iota_v = jax.lax.broadcasted_iota(jnp.int32, (TB, sc, V), 2)
        onehot = (blk[:, :, None] == iota_v).astype(jnp.float32)       # (TB, sc, V)
        counts = counts + onehot.sum(axis=1)

    # sum_s emb[ids[b, s], :]  ==  counts @ emb   (arbitrary floats -> full f32).
    emb_sum = jnp.dot(counts, emb,
                      preferred_element_type=jnp.float32,
                      precision=jax.lax.Precision.HIGHEST)             # (TB, E)

    # sum_s (emb[ids[b, s], :] != 1)  ==  counts @ mask.
    # counts are exact small integers (<= S) and mask is 0/1, so bf16 x bf16 is
    # bit-exact and ~3x cheaper on the MXU than an f32 matmul (valid while S<=256).
    if S <= 256:
        valid = jnp.dot(counts.astype(jnp.bfloat16), mask,
                        preferred_element_type=jnp.float32)            # (TB, E)
    else:
        valid = jnp.dot(counts, mask.astype(jnp.float32),
                        preferred_element_type=jnp.float32,
                        precision=jax.lax.Precision.HIGHEST)

    # Exact divide (matches reference; 0-valid rows produce inf/NaN as in PyTorch).
    out_ref[...] = (emb_sum / valid).astype(out_ref.dtype)


def baseline_forward(token_ids, embedding_matrix):
    """token_ids: int array squeezing to (B, S); embedding_matrix: (V, E) float."""
    # torch.squeeze(token_ids); only squeeze the singleton seq axis when present
    # so a batch of 1 is not accidentally squeezed away.
    ids = token_ids
    if ids.ndim == 3 and ids.shape[1] == 1:
        ids = jnp.squeeze(ids, axis=1)
    else:
        ids = jnp.squeeze(ids)
    assert ids.ndim == 2, "expected (B, S) token ids after squeeze"
    ids = ids.astype(jnp.int32)

    B, S = ids.shape
    V, E = embedding_matrix.shape
    emb = embedding_matrix.astype(jnp.float32)

    # ---- batch blocking: fill MXU rows, keep >= 2 grid steps when batch allows.
    B8 = _round_up(B, 8)
    if B8 <= 8:
        TB = 8
    else:
        TB = min(256, _round_up((B8 + 1) // 2, 8))
    B_pad = _round_up(B, TB)
    if B_pad != B:
        ids = jnp.pad(ids, ((0, B_pad - B), (0, 0)))   # pad rows use id 0; sliced off

    # ---- vocab padding: lane-dense counts and a full-tile MXU contraction.
    V_pad = _round_up(V, 128)
    if V_pad != V:
        emb = jnp.pad(emb, ((0, V_pad - V), (0, 0)))   # zero rows are never indexed

    # Precompute the validity mask once (bf16 is exact for 0/1) instead of
    # rebuilding V*E compares on every grid step inside the kernel.
    mask = (emb != 1.0).astype(jnp.bfloat16)

    grid = (B_pad // TB,)

    def build(single_buffer_table):
        table_kwargs = (dict(pipeline_mode=pl.Buffered(1))
                        if single_buffer_table else {})
        n_table_bufs = 1 if single_buffer_table else 2

        # Generation-aware VMEM budget (v5e/v6e 128 MiB, v7x 64 MiB per core).
        try:
            vmem_cap = int(pltpu.get_tpu_info().vmem_capacity_bytes)
        except Exception:
            vmem_cap = 64 << 20
        est = (n_table_bufs * V_pad * E * 4        # resident f32 table
               + n_table_bufs * V_pad * E * 2      # resident bf16 mask
               + 2 * TB * S * 4                    # ids block (double-buffered)
               + 2 * TB * E * 4                    # out block (double-buffered)
               + TB * V_pad * (4 + 2)              # counts (f32 + bf16 copy)
               + (4 << 20))                        # one-hot chunk + headroom
        vmem_limit = int(min(max(est, 32 << 20), int(vmem_cap * 0.85)))

        grid_spec = pltpu.PrefetchScalarGridSpec(
            num_scalar_prefetch=0,
            grid=grid,
            in_specs=[
                pl.BlockSpec((TB, S), lambda i: (i, 0)),                     # ids block
                pl.BlockSpec((V_pad, E), lambda i: (0, 0), **table_kwargs),  # table
                pl.BlockSpec((V_pad, E), lambda i: (0, 0), **table_kwargs),  # mask
            ],
            out_specs=pl.BlockSpec((TB, E), lambda i: (i, 0)),
        )
        return pl.pallas_call(
            _baseline_kernel,
            out_shape=jax.ShapeDtypeStruct((B_pad, E), jnp.float32),
            grid_spec=grid_spec,
            compiler_params=pltpu.CompilerParams(
                dimension_semantics=("parallel",),   # shard batch across v7x TCs
                vmem_limit_bytes=vmem_limit,
            ),
        )

    try:
        out = build(True)(ids, emb, mask)
    except Exception:
        # Fall back to default double-buffering if Buffered(1) is rejected.
        out = build(False)(ids, emb, mask)

    return out[:B]


if __name__ == "__main__":
    key = jax.random.PRNGKey(0)
    k_emb, k_ids, k_len = jax.random.split(key, 3)

    B, S, V, E = 4, 8, 32, 128
    PAD = 1  # padding token whose embedding row is all ones (excluded by the !=1 count)

    # Deterministic "pretrained" embedding matrix; pad row set to 1.0 everywhere.
    embedding_matrix = jax.random.normal(k_emb, (V, E), dtype=jnp.float32)
    embedding_matrix = embedding_matrix.at[PAD].set(1.0)

    # token ids in [2, V), then pad the tail of each sequence with PAD.
    token_ids = jax.random.randint(k_ids, (B, 1, S), 2, V, dtype=jnp.int32)
    lengths = jax.random.randint(k_len, (B,), 3, S + 1, dtype=jnp.int32)  # >=3 valid tokens
    pos = jnp.arange(S)[None, None, :]
    token_ids = jnp.where(pos < lengths[:, None, None], token_ids, PAD)

    out = baseline_forward(token_ids, embedding_matrix)
    out = jax.block_until_ready(out)

    # Pure-JAX reference with identical semantics.
    ids2d = jnp.squeeze(token_ids, axis=1)
    ref_emb = embedding_matrix[ids2d]                               # (B, S, E)
    ref = ref_emb.sum(axis=1) / (ref_emb != 1.0).sum(axis=1).astype(jnp.float32)

    assert out.shape == (B, E)
    assert jnp.allclose(out, ref, atol=1e-5, rtol=1e-5), "mismatch vs reference"
    print("KERNEL_OK")
</pallas_src>

<mosaic_0001>
module attributes {stable_mosaic.version = 11 : i64} {
  func.func @_baseline_kernel(%arg0: i32, %arg1: memref<8x8xi32, #tpu.memory_space<vmem>>, %arg2: memref<128x128xf32, #tpu.memory_space<vmem>>, %arg3: memref<128x128xbf16, #tpu.memory_space<vmem>>, %arg4: memref<8x128xf32, #tpu.memory_space<vmem>>) attributes {dimension_semantics = [#tpu.dimension_semantics<parallel>], iteration_bounds = array<i64: 1>, scalar_prefetch = 0 : i64, scratch_operands = 0 : i64, tpu.core_type = #tpu.core_type<tc>, window_params = [{transform_indices = @transform_0, window_bounds = array<i64: 8, 8>}, {pipeline_mode = #tpu.pipeline_mode<synchronous>, transform_indices = @transform_1, window_bounds = array<i64: 128, 128>}, {pipeline_mode = #tpu.pipeline_mode<synchronous>, transform_indices = @transform_2, window_bounds = array<i64: 128, 128>}, {transform_indices = @transform_3, window_bounds = array<i64: 8, 128>}]} {
    %c0 = arith.constant 0 : index
    %c0_0 = arith.constant 0 : index
    %0 = vector.load %arg1[%c0, %c0_0] : memref<8x8xi32, #tpu.memory_space<vmem>>, vector<8x8xi32>
    %c0_1 = arith.constant 0 : index
    %c0_2 = arith.constant 0 : index
    %1 = vector.load %arg2[%c0_1, %c0_2] : memref<128x128xf32, #tpu.memory_space<vmem>>, vector<128x128xf32>
    %c0_3 = arith.constant 0 : index
    %c0_4 = arith.constant 0 : index
    %2 = vector.load %arg3[%c0_3, %c0_4] : memref<128x128xbf16, #tpu.memory_space<vmem>>, vector<128x128xbf16>
    %cst = arith.constant 0.000000e+00 : f32
    %3 = vector.broadcast %cst : f32 to vector<8x128xf32>
    %4 = tpu.iota {dimensions = array<i32: 2>} : vector<8x8x128xi32>
    %5 = vector.shape_cast %0 : vector<8x8xi32> to vector<8x8x1xi32>
    %6 = vector.broadcast %5 : vector<8x8x1xi32> to vector<8x8x128xi32>
    %7 = arith.cmpi eq, %6, %4 : vector<8x8x128xi32>
    %8 = arith.extui %7 : vector<8x8x128xi1> to vector<8x8x128xi32>
    %9 = arith.sitofp %8 : vector<8x8x128xi32> to vector<8x8x128xf32>
    %cst_5 = arith.constant dense<0.000000e+00> : vector<8x128xf32>
    %10 = vector.multi_reduction <add>, %9, %cst_5 [1] : vector<8x8x128xf32> to vector<8x128xf32>
    %11 = arith.addf %3, %10 : vector<8x128xf32>
    %cst_6 = arith.constant dense<0.000000e+00> : vector<8x128xf32>
    %12 = tpu.matmul %11, %1, %cst_6 {dimension_numbers = #tpu.dot_dimension_numbers<[1], [0], [0], [1], [0, 0, 1, 1], [], []>, precision = #tpu.contract_precision<fp32>} : vector<8x128xf32>, vector<128x128xf32>, vector<8x128xf32> -> vector<8x128xf32>
    %13 = arith.truncf %11 : vector<8x128xf32> to vector<8x128xbf16>
    %cst_7 = arith.constant dense<0.000000e+00> : vector<8x128xf32>
    %14 = tpu.matmul %13, %2, %cst_7 {dimension_numbers = #tpu.dot_dimension_numbers<[1], [0], [0], [1], [0, 0, 1, 1], [], []>} : vector<8x128xbf16>, vector<128x128xbf16>, vector<8x128xf32> -> vector<8x128xf32>
    %15 = arith.divf %12, %14 : vector<8x128xf32>
    %c0_8 = arith.constant 0 : index
    %c0_9 = arith.constant 0 : index
    %16 = vector.load %arg4[%c0_8, %c0_9] : memref<8x128xf32, #tpu.memory_space<vmem>>, vector<8x128xf32>
    tpu.vector_store %arg4[%c0_8, %c0_9], %15 {strides = array<i32>} : memref<8x128xf32, #tpu.memory_space<vmem>>, vector<8x128xf32>,
    return
  }
  func.func @transform_0(%arg0: i32) -> (i32, i32) {
    %c0_i32 = arith.constant 0 : i32
    %c0_i32_0 = arith.constant 0 : i32
    return %arg0, %c0_i32 : i32, i32
  }
  func.func @transform_1(%arg0: i32) -> (i32, i32) {
    %c0_i32 = arith.constant 0 : i32
    %c0_i32_0 = arith.constant 0 : i32
    %c0_i32_1 = arith.constant 0 : i32
    return %c0_i32, %c0_i32_0 : i32, i32
  }
  func.func @transform_2(%arg0: i32) -> (i32, i32) {
    %c0_i32 = arith.constant 0 : i32
    %c0_i32_0 = arith.constant 0 : i32
    %c0_i32_1 = arith.constant 0 : i32
    return %c0_i32, %c0_i32_0 : i32, i32
  }
  func.func @transform_3(%arg0: i32) -> (i32, i32) {
    %c0_i32 = arith.constant 0 : i32
    %c0_i32_0 = arith.constant 0 : i32
    return %arg0, %c0_i32 : i32, i32
  }
}

module attributes {stable_mosaic.version = 11 : i64} {
  func.func @_baseline_kernel(%arg0: i32, %arg1: memref<8x8xi32, #tpu.memory_space<vmem>>, %arg2: memref<128x128xf32, #tpu.memory_space<vmem>>, %arg3: memref<128x128xbf16, #tpu.memory_space<vmem>>, %arg4: memref<8x128xf32, #tpu.memory_space<vmem>>) attributes {dimension_semantics = [#tpu.dimension_semantics<parallel>], iteration_bounds = array<i64: 1>, scalar_prefetch = 0 : i64, scratch_operands = 0 : i64, tpu.core_type = #tpu.core_type<tc>, window_params = [{transform_indices = @transform_0, window_bounds = array<i64: 8, 8>}, {pipeline_mode = #tpu.pipeline_mode<synchronous>, transform_indices = @transform_1, window_bounds = array<i64: 128, 128>}, {pipeline_mode = #tpu.pipeline_mode<synchronous>, transform_indices = @transform_2, window_bounds = array<i64: 128, 128>}, {transform_indices = @transform_3, window_bounds = array<i64: 8, 128>}]} {
    %c0 = arith.constant 0 : index
    %c0_0 = arith.constant 0 : index
    %0 = vector.load %arg1[%c0, %c0_0] : memref<8x8xi32, #tpu.memory_space<vmem>>, vector<8x8xi32>
    %c0_1 = arith.constant 0 : index
    %c0_2 = arith.constant 0 : index
    %1 = vector.load %arg2[%c0_1, %c0_2] : memref<128x128xf32, #tpu.memory_space<vmem>>, vector<128x128xf32>
    %c0_3 = arith.constant 0 : index
    %c0_4 = arith.constant 0 : index
    %2 = vector.load %arg3[%c0_3, %c0_4] : memref<128x128xbf16, #tpu.memory_space<vmem>>, vector<128x128xbf16>
    %cst = arith.constant 0.000000e+00 : f32
    %3 = vector.broadcast %cst : f32 to vector<8x128xf32>
    %4 = tpu.iota {dimensions = array<i32: 2>} : vector<8x8x128xi32>
    %5 = vector.shape_cast %0 : vector<8x8xi32> to vector<8x8x1xi32>
    %6 = vector.broadcast %5 : vector<8x8x1xi32> to vector<8x8x128xi32>
    %7 = arith.cmpi eq, %6, %4 : vector<8x8x128xi32>
    %8 = arith.extui %7 : vector<8x8x128xi1> to vector<8x8x128xi32>
    %9 = arith.sitofp %8 : vector<8x8x128xi32> to vector<8x8x128xf32>
    %cst_5 = arith.constant dense<0.000000e+00> : vector<8x128xf32>
    %10 = vector.multi_reduction <add>, %9, %cst_5 [1] : vector<8x8x128xf32> to vector<8x128xf32>
    %11 = arith.addf %3, %10 : vector<8x128xf32>
    %cst_6 = arith.constant dense<0.000000e+00> : vector<8x128xf32>
    %12 = tpu.matmul %11, %1, %cst_6 {dimension_numbers = #tpu.dot_dimension_numbers<[1], [0], [0], [1], [0, 0, 1, 1], [], []>, precision = #tpu.contract_precision<fp32>} : vector<8x128xf32>, vector<128x128xf32>, vector<8x128xf32> -> vector<8x128xf32>
    %13 = arith.truncf %11 : vector<8x128xf32> to vector<8x128xbf16>
    %cst_7 = arith.constant dense<0.000000e+00> : vector<8x128xf32>
    %14 = tpu.matmul %13, %2, %cst_7 {dimension_numbers = #tpu.dot_dimension_numbers<[1], [0], [0], [1], [0, 0, 1, 1], [], []>} : vector<8x128xbf16>, vector<128x128xbf16>, vector<8x128xf32> -> vector<8x128xf32>
    %15 = arith.divf %12, %14 : vector<8x128xf32>
    %c0_8 = arith.constant 0 : index
    %c0_9 = arith.constant 0 : index
    %16 = vector.load %arg4[%c0_8, %c0_9] : memref<8x128xf32, #tpu.memory_space<vmem>>, vector<8x128xf32>
    tpu.vector_store %arg4[%c0_8, %c0_9], %15 {strides = array<i32>} : memref<8x128xf32, #tpu.memory_space<vmem>>, vector<8x128xf32>,
    return
  }
  func.func @transform_0(%arg0: i32) -> (i32, i32) {
    %c0_i32 = arith.constant 0 : i32
    %c0_i32_0 = arith.constant 0 : i32
    return %arg0, %c0_i32 : i32, i32
  }
  func.func @transform_1(%arg0: i32) -> (i32, i32) {
    %c0_i32 = arith.constant 0 : i32
    %c0_i32_0 = arith.constant 0 : i32
    %c0_i32_1 = arith.constant 0 : i32
    return %c0_i32, %c0_i32_0 : i32, i32
  }
  func.func @transform_2(%arg0: i32) -> (i32, i32) {
    %c0_i32 = arith.constant 0 : i32
    %c0_i32_0 = arith.constant 0 : i32
    %c0_i32_1 = arith.constant 0 : i32
    return %c0_i32, %c0_i32_0 : i32, i32
  }
  func.func @transform_3(%arg0: i32) -> (i32, i32) {
    %c0_i32 = arith.constant 0 : i32
    %c0_i32_0 = arith.constant 0 : i32
    return %arg0, %c0_i32 : i32, i32
  }
}

</mosaic_0001>

<bundles_post_ra>
// kernel: tpu_custom_call.1
= control target key start
LH: loop header
LB: loop body
LE: loop exit
PB: predicated region body
PF: predicated region fallthrough
CT: control target
= control target key end

     0   :  { %8 = vsyncpa [#allocation3], 0  ;;  %s2008_s0 = inlined_call_operand.hbm [shape: s32[8,8], index: 0, kind: input, shape index: {}]   ;;  %s2009_s1 = inlined_call_operand.hbm [shape: f32[128,128], index: 1, kind: input, shape index: {}]   ;;  %s2010_s2 = inlined_call_operand.hbm [shape: bf16[128,128], index: 2, kind: input, shape index: {}]   ;;  %s2011_s3 = inlined_call_operand.hbm [shape: f32[8,128], index: 3, kind: output, shape index: {}]  }
   0x1   :  { %9 = vsyncpa [#allocation6], 0 }
   0x2   :  { %10 = vsyncpa [#allocation4], 0  ;;  %s1655_s12 = smov [#allocation5]   ;;  %s1561_s16 = scalar_lea.hbm %s2009_s1, 2048 }
   0x3   :  { %s26_s13 = sshll.u32 %s1655_s12, 4  ;;  %p1562_p0 = scmp.ne.s32.totalorder %s2009_s1, %s1561_s16  ;;  %s27_s13 = int_to_ptr.vmem [resolvable:$true] %s26_s13 }
   0x4   :  { %p1565_p1 = scmp.lt.u32.totalorder %s1561_s16, %s2009_s1 }
   0x6   :  { %p1567_p2 = pnand %p1565_p1, %p1562_p0 }
   0x8   :  { %1570 = shalt.err (!%p1567_p2)
}
   0x9   :  { %s1571_s21 = scalar_lea.vmem %s27_s13, 2048  ;;  %p1576_p4 = scmp.lt.s32.totalorder %s27_s13, %s27_s13 }
   0xa   :  { %p1572_p3 = scmp.ne.s32.totalorder %s27_s13, %s1571_s21  ;;  %p1577_p5 = scmp.lt.s32.totalorder %s1571_s21, %s1571_s21 }
   0xc   :  { %p1578_p6 = por %p1577_p5, %p1576_p4 }
   0xe   :  { %p1579_p7 = pnand %p1578_p6, %p1572_p3 }
  0x10   :  { %1582 = shalt.err (!%p1579_p7)
}
  0x11   :  { %s1656_s22 = smov 128   ;;  %s1657_s23 = smov 8  }
  0x12   :  { %32 = dma.hbm_to_vmem [thread:$0]  %s2009_s1, 2048, %s27_s13, [#allocation6], %s1656_s22, %s1656_s22, %s1657_s23  }
  0x13   :  { %s1658_s26 = smov [#allocation2]   ;;  %s1659_s28 = smov [#allocation7]  }
  0x14   :  { %s17_s27 = sshll.u32 %s1658_s26, 4  ;;  %s38_s29 = sshll.u32 %s1659_s28, 4  ;;  %s18_s27 = int_to_ptr.vmem [resolvable:$true] %s17_s27  ;;  %s39_s29 = int_to_ptr.vmem [resolvable:$true] %s38_s29 }
  0x15   :  { %s1583_s5 = scalar_lea.hbm %s2008_s0, 128 }
  0x16   :  { %p1584_p8 = scmp.ne.s32.totalorder %s2008_s0, %s1583_s5  ;;  %p1587_p9 = scmp.lt.u32.totalorder %s1583_s5, %s2008_s0 }
  0x18   :  { %p1589_p10 = pnand %p1587_p9, %p1584_p8 }
  0x1a   :  { %1592 = shalt.err (!%p1589_p10)
}
  0x1b   :  { %s1593_s1 = scalar_lea.vmem %s18_s27, 128  ;;  %p1598_p12 = scmp.lt.s32.totalorder %s18_s27, %s18_s27 }
  0x1c   :  { %p1594_p11 = scmp.ne.s32.totalorder %s18_s27, %s1593_s1  ;;  %p1599_p13 = scmp.lt.s32.totalorder %s1593_s1, %s1593_s1 }
  0x1e   :  { %p1600_p0 = por %p1599_p13, %p1598_p12 }
  0x20   :  { %p1601_p1 = pnand %p1600_p0, %p1594_p11 }
  0x22   :  { %1604 = shalt.err (!%p1601_p1)
}
  0x23   :  { %20 = dma.hbm_to_vmem [thread:$0]  %s2008_s0, 128, %s18_s27, [#allocation3]  }
  0x24   :  { %s1605_s14 = scalar_lea.hbm %s2010_s2, 1024 }
  0x25   :  { %p1606_p2 = scmp.ne.s32.totalorder %s2010_s2, %s1605_s14  ;;  %p1609_p3 = scmp.lt.u32.totalorder %s1605_s14, %s2010_s2 }
  0x27   :  { %p1611_p4 = pnand %p1609_p3, %p1606_p2 }
  0x29   :  { %1614 = shalt.err (!%p1611_p4)
}
  0x2a   :  { %s1615_s19 = scalar_lea.vmem %s39_s29, 1024  ;;  %p1620_p6 = scmp.lt.s32.totalorder %s39_s29, %s39_s29 }
  0x2b   :  { %p1616_p5 = scmp.ne.s32.totalorder %s39_s29, %s1615_s19  ;;  %p1621_p7 = scmp.lt.s32.totalorder %s1615_s19, %s1615_s19 }
  0x2d   :  { %p1622_p8 = por %p1621_p7, %p1620_p6 }
  0x2f   :  { %p1623_p9 = pnand %p1622_p8, %p1616_p5 }
  0x31   :  { %1626 = shalt.err (!%p1623_p9)
}
  0x32   :  { %s1660_s0 = smov 64   ;;  %s1661_s20 = smov 4  }
  0x33   :  { %44 = dma.hbm_to_vmem [thread:$0]  %s2010_s2, 1024, %s39_s29, [#allocation6], %s1660_s0, %s1660_s0, %s1661_s20  }
  0x34   :  { %1649 = dma.done.wait [#allocation3], 128  }
  0x35   :  { %1650 = vsyncadd [#allocation3], 4294967168 }
  0x36   :  { %1651 = dma.done.wait [#allocation6], 3072  }
  0x37   :  { %1652 = vsyncadd [#allocation6], 4294964224  ;;  %v88_v0 = vlaneseq  ;;  %v1662_v1 = vmov 0.0|0.0   ;;  %v55_v7 = vld [vmem:[#allocation2] sm:$0xff]  ;;  %v56_v8 = vld [vmem:[#allocation5] sm:$0xff]  ;;  %vm1663_vm0 = vmmov 0  }
  0x38   :  { %1435 = vmatprep.subr.bf16.mxu0 %v1662_v1  ;;  %1387 = vmatprep.subr.bf16.mxu1 %v1662_v1  ;;  %v57_v9 = vld [vmem:[#allocation5 + $0x8] sm:$0xff]  ;;  %v58_v12 = vld [vmem:[#allocation5 + $0x10] sm:$0xff]  ;;  %v59_v13 = vld [vmem:[#allocation5 + $0x18] sm:$0xff]  ;;  %v250_v20 = vand.u32 4294901760, %v56_v8  ;;  %vm234_vm9 = vcmask 1041409   ;;  %vm236_vm10 = vcmask 1042434  }
  0x39   :  { %v91_v2 = vshrl.u32 %v88_v0, 7  ;;  %v60_v14 = vld [vmem:[#allocation5 + $0x20] sm:$0xff]  ;;  %v61_v19 = vld [vmem:[#allocation5 + $0x28] sm:$0xff]  ;;  %v253_v21 = vand.u32 4294901760, %v57_v9  ;;  %v256_v22 = vand.u32 4294901760, %v58_v12  ;;  %v259_v23 = vand.u32 4294901760, %v59_v13 }
  0x3a   :  { %v262_v25 = vand.u32 4294901760, %v60_v14  ;;  %v265_v26 = vand.u32 4294901760, %v61_v19  ;;  %v62_v27 = vld [vmem:[#allocation5 + $0x30] sm:$0xff]  ;;  %v63_v28 = vld [vmem:[#allocation5 + $0x38] sm:$0xff]  ;;  %v1725_v29 = vsub.f32 %v56_v8, %v250_v20  ;;  %v64_v44 = vld [vmem:[#allocation5 + $0x40] sm:$0xff]  ;;  %vm238_vm11 = vcmask 1043459  }
  0x3b   :  { %v106_v3 = vsub.s32 2, %v91_v2  ;;  %v92_v4 = vsub.s32 0, %v91_v2  ;;  %v113_v5 = vsub.s32 3, %v91_v2  ;;  %v99_v6 = vsub.s32 1, %v91_v2  ;;  %v65_v45 = vld [vmem:[#allocation5 + $0x48] sm:$0xff]  ;;  %v66_v54 = vld [vmem:[#allocation5 + $0x50] sm:$0xff] }
  0x3c   :  { %v127_v17 = vsub.s32 5, %v91_v2  ;;  %v120_v18 = vsub.s32 4, %v91_v2  ;;  %v141_v24 = vsub.s32 7, %v91_v2  ;;  %v1727_v30 = vsub.f32 %v57_v9, %v253_v21  ;;  %v67_v55 = vld [vmem:[#allocation5 + $0x58] sm:$0xff]  ;;  %v68_v58 = vld [vmem:[#allocation5 + $0x60] sm:$0xff]  ;;  %v69_v63 = vld [vmem:[#allocation5 + $0x68] sm:$0xff] }
  0x3d   :  { %v107_v10 = vrot.slane %v55_v7, %v106_v3  ;;  %v93_v11 = vrot.slane %v55_v7, %v92_v4  ;;  %v114_v15 = vrot.slane %v55_v7, %v113_v5  ;;  %v100_v16 = vrot.slane %v55_v7, %v99_v6  ;;  %v70_v8 = vld [vmem:[#allocation5 + $0x70] sm:$0xff]  ;;  %v71_v9 = vld [vmem:[#allocation5 + $0x78] sm:$0xff]  ;;  %s1665_s2 = smov [#allocation8]  }
  0x3e   :  { %v1729_v31 = vsub.f32 %v58_v12, %v256_v22  ;;  %v1731_v32 = vsub.f32 %v59_v13, %v259_v23  ;;  %v1733_v33 = vpack.c.bf16 %v253_v21, %v250_v20  ;;  %v128_v34 = vrot.slane %v55_v7, %v127_v17  ;;  %s1020_s23 = sshll.u32 %s1665_s2, 4  ;;  %s1021_s23 = int_to_ptr.vmem [resolvable:$true] %s1020_s23 }
  0x3f   :  { %109 = vbcast.lane.b32.xlu1 %v107_v10, 256  ;;  %95 = vbcast.lane.b32.xlu0 %v93_v11, 256  ;;  %v121_v35 = vrot.slane %v55_v7, %v120_v18  ;;  %v134_v36 = vsub.s32 6, %v91_v2  ;;  %v1436_v37 = vpack.c.bf16 %v1727_v30, %v1725_v29  ;;  %v1738_v38 = vsub.f32 %v60_v14, %v262_v25  ;;  %s1627_s24 = scalar_lea.vmem %s1021_s23, 128  ;;  %p1632_p11 = scmp.lt.s32.totalorder %s1021_s23, %s1021_s23 }
  0x40   :  { %1389 = vmatpush3.bf16.msra.mxu1 %v1733_v33  ;;  %v1740_v39 = vsub.f32 %v61_v19, %v265_v26  ;;  %v1742_v40 = vpack.c.bf16 %v259_v23, %v256_v22  ;;  %v268_v41 = vand.u32 4294901760, %v62_v27  ;;  %v1439_v42 = vpack.c.bf16 %v1731_v32, %v1729_v31  ;;  %p1628_p10 = scmp.ne.s32.totalorder %s1021_s23, %s1627_s24  ;;  %p1633_p12 = scmp.lt.s32.totalorder %s1627_s24, %s1627_s24 }
  0x41   :  { %1437 = vmatpush3.bf16.msra.mxu0 %v1436_v37  ;;  %1390 = vmatprep.subr.bf16.mxu1 %v1662_v1  ;;  %v271_v43 = vand.u32 4294901760, %v63_v28  ;;  %v142_v46 = vrot.slane %v55_v7, %v141_v24  ;;  %v135_v47 = vrot.slane %v55_v7, %v134_v36  ;;  %v1751_v49 = vpack.c.bf16 %v265_v26, %v262_v25 }
  0x42   :  { %1438 = vmatprep.subr.bf16.mxu0 %v1662_v1  ;;  %v1442_v48 = vpack.c.bf16 %v1740_v39, %v1738_v38  ;;  %v1753_v50 = vsub.f32 %v62_v27, %v268_v41  ;;  %v274_v52 = vand.u32 4294901760, %v64_v44  ;;  %v277_v53 = vand.u32 4294901760, %v65_v45  ;;  %p1634_p13 = por %p1633_p12, %p1632_p11 }
  0x43   :  { %116 = vbcast.lane.b32.xlu1 %v114_v15, 256  ;;  %102 = vbcast.lane.b32.xlu0 %v100_v16, 256  ;;  %v1755_v51 = vsub.f32 %v63_v28, %v271_v43  ;;  %v1760_v56 = vpack.c.bf16 %v271_v43, %v268_v41  ;;  %v280_v57 = vand.u32 4294901760, %v66_v54  ;;  %v283_v62 = vand.u32 4294901760, %v67_v55 }
  0x44   :  { %1392 = vmatpush3.bf16.msra.mxu1 %v1742_v40  ;;  %v1764_v60 = vsub.f32 %v64_v44, %v274_v52  ;;  %v1766_v61 = vsub.f32 %v65_v45, %v277_v53  ;;  %v286_v2 = vand.u32 4294901760, %v68_v58  ;;  %v1771_v3 = vpack.c.bf16 %v277_v53, %v274_v52  ;;  %p1635_p0 = pnand %p1634_p13, %p1628_p10 }
  0x45   :  { %1440 = vmatpush3.bf16.msra.mxu0 %v1439_v42  ;;  %1393 = vmatprep.subr.bf16.mxu1 %v1662_v1  ;;  %v1445_v59 = vpack.c.bf16 %v1755_v51, %v1753_v50  ;;  %v289_v4 = vand.u32 4294901760, %v69_v63  ;;  %v1775_v6 = vsub.f32 %v66_v54, %v280_v57  ;;  %v1777_v7 = vsub.f32 %v67_v55, %v283_v62 }
  0x46   :  { %1441 = vmatprep.subr.bf16.mxu0 %v1662_v1  ;;  %v1448_v5 = vpack.c.bf16 %v1766_v61, %v1764_v60  ;;  %v343_v10 = vand.u32 4294901760, %v1725_v29  ;;  %v350_v11 = vand.u32 4294901760, %v1727_v30  ;;  %v1783_v12 = vsub.f32 %v68_v58, %v286_v2 }
  0x47   :  { %130 = vbcast.lane.b32.xlu1 %v128_v34, 256  ;;  %123 = vbcast.lane.b32.xlu0 %v121_v35, 256  ;;  %v1664_v13 = vmov 0.0   ;;  %v1790_v14 = vsub.f32 %v69_v63, %v289_v4  ;;  %v1792_v15 = vpack.c.bf16 %v283_v62, %v280_v57  ;;  %v292_v16 = vand.u32 4294901760, %v70_v8 }
  0x48   :  { %1395 = vmatpush3.bf16.msra.mxu1 %v1751_v49  ;;  %1259 = vmatprep.mubr.msk.f32.mxu0 %vm1663_vm0, %v1664_v13  ;;  %v295_v17 = vand.u32 4294901760, %v71_v9  ;;  %v1451_v18 = vpack.c.bf16 %v1777_v7, %v1775_v6  ;;  %v344_v19 = vsub.f32 %v1725_v29, %v343_v10  ;;  %v351_v20 = vsub.f32 %v1727_v30, %v350_v11 }
  0x49   :  { %1443 = vmatpush3.bf16.msra.mxu0 %v1442_v48  ;;  %1396 = vmatprep.subr.bf16.mxu1 %v1662_v1  ;;  %v1454_v21 = vpack.c.bf16 %v1790_v14, %v1783_v12  ;;  %v1807_v22 = vsub.f32 %v70_v8, %v292_v16  ;;  %v1811_v24 = vpack.c.bf16 %v289_v4, %v286_v2  ;;  %v357_v27 = vand.u32 4294901760, %v1729_v31 }
  0x4a   :  { %1444 = vmatprep.subr.bf16.mxu0 %v1662_v1  ;;  %1189 = vmatprep.mubr.msk.f32.mxu1 %vm1663_vm0, %v1664_v13  ;;  %v1809_v23 = vsub.f32 %v71_v9, %v295_v17  ;;  %v345_v25 = vand.u32 4294901760, %v344_v19  ;;  %v352_v26 = vand.u32 4294901760, %v351_v20  ;;  %v364_v28 = vand.u32 4294901760, %v1731_v32 }
  0x4b   :  { %144 = vbcast.lane.b32.xlu1 %v142_v46, 256  ;;  %137 = vbcast.lane.b32.xlu0 %v135_v47, 256  ;;  %v358_v35 = vsub.f32 %v1729_v31, %v357_v27  ;;  %v1824_v41 = vpack.c.bf16 %v295_v17, %v292_v16  ;;  %v371_v44 = vand.u32 4294901760, %v1738_v38  ;;  %v378_v45 = vand.u32 4294901760, %v1740_v39 }
  0x4c   :  { %1398 = vmatpush3.bf16.msra.mxu1 %v1760_v56  ;;  %v1817_v34 = vpack.c.bf16 %v352_v26, %v345_v25  ;;  %v365_v36 = vsub.f32 %v1731_v32, %v364_v28  ;;  %v1457_v37 = vpack.c.bf16 %v1809_v23, %v1807_v22  ;;  %v385_v52 = vand.u32 4294901760, %v1753_v50 }
  0x4d   :  { %1446 = vmatpush3.bf16.msra.mxu0 %v1445_v59  ;;  %1399 = vmatprep.subr.bf16.mxu1 %v1662_v1  ;;  %v359_v42 = vand.u32 4294901760, %v358_v35  ;;  %v372_v32 = vsub.f32 %v1738_v38, %v371_v44  ;;  %v379_v46 = vsub.f32 %v1740_v39, %v378_v45  ;;  %v392_v53 = vand.u32 4294901760, %v1755_v51 }
  0x4e   :  { %1447 = vmatprep.subr.bf16.mxu0 %v1662_v1  ;;  %v366_v43 = vand.u32 4294901760, %v365_v36  ;;  %v386_v55 = vsub.f32 %v1753_v50, %v385_v52  ;;  %v399_v58 = vand.u32 4294901760, %v1764_v60  ;;  %v406_v59 = vand.u32 4294901760, %v1766_v61 }
  0x4f   :  { %v373_v47 = vand.u32 4294901760, %v372_v32  ;;  %v380_v48 = vand.u32 4294901760, %v379_v46  ;;  %v393_v38 = vsub.f32 %v1755_v51, %v392_v53  ;;  %v413_v8 = vand.u32 4294901760, %v1775_v6 }
  0x50   :  { %1401 = vmatpush3.bf16.msra.mxu1 %v1771_v3  ;;  %v1830_v31 = vpack.c.bf16 %v366_v43, %v359_v42  ;;  %v387_v39 = vand.u32 4294901760, %v386_v55  ;;  %v400_v63 = vsub.f32 %v1764_v60, %v399_v58  ;;  %v407_v2 = vsub.f32 %v1766_v61, %v406_v59 }
  0x51   :  { %1449 = vmatpush3.bf16.msra.mxu0 %v1448_v5  ;;  %1402 = vmatprep.subr.bf16.mxu1 %v1662_v1  ;;  %v1839_v54 = vpack.c.bf16 %v380_v48, %v373_v47  ;;  %v394_v57 = vand.u32 4294901760, %v393_v38  ;;  %v420_v50 = vand.u32 4294901760, %v1777_v7  ;;  %v414_v51 = vsub.f32 %v1775_v6, %v413_v8 }
  0x52   :  { %1450 = vmatprep.subr.bf16.mxu0 %v1662_v1  ;;  %v401_v4 = vand.u32 4294901760, %v400_v63  ;;  %v408_v5 = vand.u32 4294901760, %v407_v2  ;;  %v427_v19 = vand.u32 4294901760, %v1783_v12  ;;  %v434_v60 = vand.u32 4294901760, %v1790_v14 }
  0x53   :  { %v1845_v62 = vpack.c.bf16 %v394_v57, %v387_v39  ;;  %v421_v16 = vsub.f32 %v1777_v7, %v420_v50  ;;  %v415_v17 = vand.u32 4294901760, %v414_v51  ;;  %v441_v35 = vand.u32 4294901760, %v1807_v22 }
  0x54   :  { %1404 = vmatpush3.bf16.msra.mxu1 %v1792_v15  ;;  %v1851_v9 = vpack.c.bf16 %v408_v5, %v401_v4  ;;  %v428_v61 = vsub.f32 %v1783_v12, %v427_v19  ;;  %v448_v6 = vand.u32 4294901760, %v1809_v23  ;;  %v1871_v42 = vpack.c.bf16 %v350_v11, %v343_v10 }
  0x55   :  { %1452 = vmatpush3.bf16.msra.mxu0 %v1451_v18  ;;  %1405 = vmatprep.subr.bf16.mxu1 %v1662_v1  ;;  %v422_v18 = vand.u32 4294901760, %v421_v16  ;;  %v442_v7 = vsub.f32 %v1807_v22, %v441_v35  ;;  %v1875_v32 = vpack.c.bf16 %v364_v28, %v357_v27  ;;  %v1877_v46 = vpack.c.bf16 %v378_v45, %v371_v44 }
  0x56   :  { %1453 = vmatprep.subr.bf16.mxu0 %v1662_v1  ;;  %v429_v25 = vand.u32 4294901760, %v428_v61  ;;  %v1879_v47 = vpack.c.bf16 %v392_v53, %v385_v52  ;;  %v1881_v48 = vpack.c.bf16 %v406_v59, %v399_v58  ;;  %v1883_v22 = vpack.c.bf16 %v420_v50, %v413_v8 }
  0x57   :  { %v1857_v20 = vpack.c.bf16 %v422_v18, %v415_v17  ;;  %v443_v12 = vand.u32 4294901760, %v442_v7  ;;  %v1887_v29 = vpack.c.bf16 %v448_v6, %v441_v35  ;;  %v89_v30 = vand.u32 127, %v88_v0 }
  0x58   :  { %1407 = vmatpush3.bf16.msra.mxu1 %v1811_v24  ;;  %vm240_vm12 = vcmask 1044484   ;;  %vm242_vm13 = vcmask 1045509   ;;  %vm244_vm14 = vcmask 1046534   ;;  %vm246_vm15 = vcmask 1047559  }
  0x59   :  { %1455 = vmatpush3.bf16.msra.mxu0 %v1454_v21  ;;  %1408 = vmatprep.subr.bf16.mxu1 %v1662_v1  ;;  %v435_v21 = vsub.f32 %v1790_v14, %v434_v60 }
  0x5a   :  { %1456 = vmatprep.subr.bf16.mxu0 %v1662_v1 }
  0x5b   :  { %v436_v26 = vand.u32 4294901760, %v435_v21 }
  0x5c   :  { %1410 = vmatpush3.bf16.msra.mxu1 %v1824_v41 }
  0x5d   :  { %1458 = vmatpush3.bf16.msra.mxu0 %v1457_v37  ;;  %1411 = vmatprep.subr.bf16.mxu1 %v1662_v1  ;;  %v1863_v36 = vpack.c.bf16 %v436_v26, %v429_v25  ;;  %v449_v37 = vsub.f32 %v1809_v23, %v448_v6  ;;  %v1885_v23 = vpack.c.bf16 %v434_v60, %v427_v19 }
  0x5e   :  { %1459 = vmatprep.subr.bf16.mxu0 %v1662_v1 }
  0x5f   :  { %v450_v14 = vand.u32 4294901760, %v449_v37 }
  0x61   :  { %v1873_v43 = vpack.c.bf16 %v450_v14, %v443_v12 }
  0xb1   :  { %v110_v10 = vpop.permute.xlu1 %109  ;;  %v96_v11 = vpop.permute.xlu0 %95 }
  0xb2   :  { %vm148_vm1 = vcmp.eq.s32.totalorder %v110_v10, %v89_v30  ;;  %vm146_vm2 = vcmp.eq.s32.totalorder %v96_v11, %v89_v30 }
  0xb3   :  { %v1032_v27 = vsel %vm148_vm1, 1.0, %v1664_v13  ;;  %v1030_v28 = vsel %vm146_vm2, 1.0, %v1664_v13 }
  0xb4   :  { %v182_v44 = vrot.slane %v1032_v27, 4  ;;  %v170_v45 = vrot.slane %v1030_v28, 4 }
  0xb5   :  { %v117_v52 = vpop.permute.xlu1 %116  ;;  %v103_v53 = vpop.permute.xlu0 %102 }
  0xb6   :  { %v183_v55 = vadd.f32 %v1032_v27, %v182_v44  ;;  %v171_v38 = vadd.f32 %v1030_v28, %v170_v45  ;;  %vm149_vm3 = vcmp.eq.s32.totalorder %v117_v52, %v89_v30  ;;  %vm147_vm4 = vcmp.eq.s32.totalorder %v103_v53, %v89_v30 }
  0xb7   :  { %v1033_v39 = vsel %vm149_vm3, 1.0, %v1664_v13  ;;  %v1031_v0 = vsel %vm147_vm4, 1.0, %v1664_v13 }
  0xb8   :  { %v184_v57 = vrot.slane %v183_v55, 2  ;;  %v172_v58 = vrot.slane %v171_v38, 2  ;;  %v188_v59 = vrot.slane %v1033_v39, 4  ;;  %v176_v63 = vrot.slane %v1031_v0, 4 }
  0xb9   :  { %v131_v2 = vpop.permute.xlu1 %130  ;;  %v124_v4 = vpop.permute.xlu0 %123 }
  0xba   :  { %v185_v5 = vadd.f32 %v184_v57, %v183_v55  ;;  %v173_v8 = vadd.f32 %v172_v58, %v171_v38  ;;  %v189_v50 = vadd.f32 %v1033_v39, %v188_v59  ;;  %v177_v51 = vadd.f32 %v1031_v0, %v176_v63 }
  0xbb   :  { %vm151_vm5 = vcmp.eq.s32.totalorder %v131_v2, %v89_v30  ;;  %vm150_vm6 = vcmp.eq.s32.totalorder %v124_v4, %v89_v30 }
  0xbc   :  { %v186_v16 = vrot.slane %v185_v5, 1  ;;  %v174_v17 = vrot.slane %v173_v8, 1  ;;  %v190_v18 = vrot.slane %v189_v50, 2  ;;  %v178_v19 = vrot.slane %v177_v51, 2 }
  0xbd   :  { %v1035_v60 = vsel %vm151_vm5, 1.0, %v1664_v13  ;;  %v1034_v61 = vsel %vm150_vm6, 1.0, %v1664_v13  ;;  %v145_v21 = vpop.permute.xlu1 %144  ;;  %v138_v25 = vpop.permute.xlu0 %137 }
  0xbe   :  { %v187_v26 = vadd.f32 %v186_v16, %v185_v5  ;;  %v175_v35 = vadd.f32 %v174_v17, %v173_v8  ;;  %v191_v6 = vadd.f32 %v190_v18, %v189_v50  ;;  %v179_v7 = vadd.f32 %v178_v19, %v177_v51 }
  0xbf   :  { %v200_v37 = vrot.slane %v1035_v60, 4  ;;  %v194_v12 = vrot.slane %v1034_v61, 4  ;;  %vm153_vm7 = vcmp.eq.s32.totalorder %v145_v21, %v89_v30  ;;  %vm152_vm8 = vcmp.eq.s32.totalorder %v138_v25, %v89_v30 }
  0xc0   :  { %v192_v14 = vrot.slane %v191_v6, 1  ;;  %v180_v10 = vrot.slane %v179_v7, 1  ;;  %v1037_v28 = vsel %vm153_vm7, 1.0, %v1664_v13  ;;  %v1036_v44 = vsel %vm152_vm8, 1.0, %v1664_v13 }
  0xc1   :  { %v201_v11 = vadd.f32 %v1035_v60, %v200_v37  ;;  %v195_v27 = vadd.f32 %v1034_v61, %v194_v12  ;;  %v892_v45 = vpack.c.bf16 %v187_v26, %v187_v26  ;;  %v890_v52 = vpack.c.bf16 %v175_v35, %v175_v35 }
  0xc2   :  { %v193_v53 = vadd.f32 %v192_v14, %v191_v6  ;;  %v181_v55 = vadd.f32 %v180_v10, %v179_v7  ;;  %v212_v0 = vrot.slane %v1037_v28, 4  ;;  %v206_v57 = vrot.slane %v1036_v44, 4 }
  0xc3   :  { %v202_v38 = vrot.slane %v201_v11, 2  ;;  %v196_v39 = vrot.slane %v195_v27, 2  ;;  %v906_v8 = vunpack.c.l.b16 %v890_v52  ;;  %v908_v16 = vunpack.c.l.b16 %v892_v45 }
  0xc4   :  { %v893_v58 = vpack.c.bf16 %v193_v53, %v193_v53  ;;  %v235_v30 = vsel %vm234_vm9, %v181_v55, %v175_v35  ;;  %v891_v59 = vpack.c.bf16 %v181_v55, %v181_v55  ;;  %v213_v5 = vadd.f32 %v1037_v28, %v212_v0 }
  0xc5   :  { %v237_v63 = vsel %vm236_vm10, %v187_v26, %v235_v30  ;;  %v203_v2 = vadd.f32 %v202_v38, %v201_v11  ;;  %v197_v4 = vadd.f32 %v196_v39, %v195_v27  ;;  %v207_v51 = vadd.f32 %v1036_v44, %v206_v57 }
  0xc6   :  { %v907_v50 = vunpack.c.l.b16 %v891_v59  ;;  %v214_v19 = vrot.slane %v213_v5, 2  ;;  %v909_v60 = vunpack.c.l.b16 %v893_v58  ;;  %v239_v21 = vsel %vm238_vm11, %v193_v53, %v237_v63 }
  0xc7   :  { %v204_v17 = vrot.slane %v203_v2, 1  ;;  %v198_v18 = vrot.slane %v197_v4, 1  ;;  %v208_v25 = vrot.slane %v207_v51, 2 }
  0xc8   :  { %v914_v61 = vsel %vm234_vm9, %v907_v50, %v906_v8  ;;  %v215_v7 = vadd.f32 %v214_v19, %v213_v5 }
  0xc9   :  { %v915_v35 = vsel %vm236_vm10, %v908_v16, %v914_v61  ;;  %v205_v26 = vadd.f32 %v204_v17, %v203_v2  ;;  %v199_v6 = vadd.f32 %v198_v18, %v197_v4  ;;  %v209_v12 = vadd.f32 %v208_v25, %v207_v51 }
  0xca   :  { %v916_v37 = vsel %vm238_vm11, %v909_v60, %v915_v35  ;;  %v216_v11 = vrot.slane %v215_v7, 1 }
  0xcb   :  { %v895_v14 = vpack.c.bf16 %v205_v26, %v205_v26  ;;  %v894_v10 = vpack.c.bf16 %v199_v6, %v199_v6  ;;  %v241_v27 = vsel %vm240_vm12, %v199_v6, %v239_v21  ;;  %v210_v28 = vrot.slane %v209_v12, 1 }
  0xcc   :  { %v217_v52 = vadd.f32 %v216_v11, %v215_v7  ;;  %v243_v39 = vsel %vm242_vm13, %v205_v26, %v241_v27 }
  0xcd   :  { %v911_v44 = vunpack.c.l.b16 %v895_v14  ;;  %v910_v45 = vunpack.c.l.b16 %v894_v10  ;;  %v211_v53 = vadd.f32 %v210_v28, %v209_v12 }
  0xce   :  { %v897_v38 = vpack.c.bf16 %v217_v52, %v217_v52 }
  0xcf   :  { %v917_v55 = vsel %vm240_vm12, %v910_v45, %v916_v37  ;;  %v896_v0 = vpack.c.bf16 %v211_v53, %v211_v53  ;;  %v245_v57 = vsel %vm244_vm14, %v211_v53, %v243_v39 }
  0xd0   :  { %v918_v58 = vsel %vm242_vm13, %v911_v44, %v917_v55  ;;  %v913_v30 = vunpack.c.l.b16 %v897_v38  ;;  %v247_v59 = vsel %vm246_vm15, %v217_v52, %v245_v57 }
  0xd1   :  { %v912_v63 = vunpack.c.l.b16 %v896_v0  ;;  %v1906_v2 = vand.u32 4294901760, %v247_v59 }
  0xd3   :  { %v331_v4 = vsub.f32 %v247_v59, %v1906_v2  ;;  %v919_v5 = vsel %vm244_vm14, %v912_v63, %v918_v58 }
  0xd4   :  { %v1909_v8 = vsel %vm246_vm15, %v913_v30, %v919_v5 }
  0xd5   :  { %1260 = vmatmul.mubr.f32.vlgmr.msra.gmra.mrb[0].mxu0 %v331_v4  ;;  %v332_v50 = vand.u32 4294901760, %v331_v4 }
  0xd6   :  { %1461 = vmatpush3.bf16.msra.mxu0 %v1733_v33  ;;  %1294 = vmatprep.mubr.msk.f32.mxu0 %vm1663_vm0, %v1664_v13 }
  0xd7   :  { %1462 = vmatprep.subr.bf16.mxu0 %v1662_v1  ;;  %v333_v51 = vsub.f32 %v331_v4, %v332_v50 }
  0xd9   :  { %v334_v16 = vand.u32 4294901760, %v333_v51 }
  0xda   :  { %1464 = vmatpush3.bf16.msra.mxu0 %v1742_v40 }
  0xdb   :  { %1190 = vmatmul.mubr.f32.vlgmr.msra.gmra.mrb[0].mxu1 %v334_v16  ;;  %1465 = vmatprep.subr.bf16.mxu0 %v1662_v1 }
  0xdc   :  { %1413 = vmatpush3.bf16.msra.mxu1 %v1817_v34  ;;  %1224 = vmatprep.mubr.msk.f32.mxu1 %vm1663_vm0, %v1664_v13  ;;  %v1551_v34 = vld [vmem:[#allocation7] sm:$0xff]  }
  0xdd   :  { %1414 = vmatprep.subr.bf16.mxu1 %v1662_v1 }
  0xde   :  { %1467 = vmatpush3.bf16.msra.mxu0 %v1751_v49 }
  0xdf   :  { %1468 = vmatprep.subr.bf16.mxu0 %v1662_v1 }
  0xe0   :  { %1416 = vmatpush3.bf16.msra.mxu1 %v1830_v31  ;;  %v1552_v31 = vld [vmem:[#allocation7 + $0x8] sm:$0xff]  }
  0xe1   :  { %1417 = vmatprep.subr.bf16.mxu1 %v1662_v1 }
  0xe2   :  { %1470 = vmatpush3.bf16.msra.mxu0 %v1760_v56 }
  0xe3   :  { %1471 = vmatprep.subr.bf16.mxu0 %v1662_v1 }
  0xe4   :  { %1419 = vmatpush3.bf16.msra.mxu1 %v1839_v54  ;;  %v1553_v54 = vld [vmem:[#allocation7 + $0x10] sm:$0xff]  }
  0xe5   :  { %1420 = vmatprep.subr.bf16.mxu1 %v1662_v1 }
  0xe6   :  { %1473 = vmatpush3.bf16.msra.mxu0 %v1771_v3 }
  0xe7   :  { %1474 = vmatprep.subr.bf16.mxu0 %v1662_v1 }
  0xe8   :  { %1422 = vmatpush3.bf16.msra.mxu1 %v1845_v62  ;;  %v1554_v62 = vld [vmem:[#allocation7 + $0x18] sm:$0xff]  }
  0xe9   :  { %1423 = vmatprep.subr.bf16.mxu1 %v1662_v1 }
  0xea   :  { %1476 = vmatpush3.bf16.msra.mxu0 %v1792_v15 }
  0xeb   :  { %1477 = vmatprep.subr.bf16.mxu0 %v1662_v1 }
  0xec   :  { %1425 = vmatpush3.bf16.msra.mxu1 %v1851_v9  ;;  %v1555_v9 = vld [vmem:[#allocation7 + $0x20] sm:$0xff]  }
  0xed   :  { %1426 = vmatprep.subr.bf16.mxu1 %v1662_v1 }
  0xee   :  { %1479 = vmatpush3.bf16.msra.mxu0 %v1811_v24 }
  0xef   :  { %1480 = vmatprep.subr.bf16.mxu0 %v1662_v1 }
  0xf0   :  { %1428 = vmatpush3.bf16.msra.mxu1 %v1857_v20  ;;  %v1556_v20 = vld [vmem:[#allocation7 + $0x28] sm:$0xff]  }
  0xf1   :  { %1429 = vmatprep.subr.bf16.mxu1 %v1662_v1 }
  0xf2   :  { %1482 = vmatpush3.bf16.msra.mxu0 %v1824_v41 }
  0xf3   :  { %1483 = vmatprep.subr.bf16.mxu0 %v1662_v1 }
  0xf4   :  { %1431 = vmatpush3.bf16.msra.mxu1 %v1863_v36  ;;  %v1557_v36 = vld [vmem:[#allocation7 + $0x30] sm:$0xff]  }
  0xf5   :  { %1295 = vmatmul.mubr.f32.vlgmr.msra.gmra.mrb[0].mxu0 %v332_v50  ;;  %1432 = vmatprep.subr.bf16.mxu1 %v1662_v1 }
  0xf6   :  { %1485 = vmatpush3.bf16.msra.mxu0 %v1871_v42  ;;  %1329 = vmatprep.mubr.msk.f32.mxu0 %vm1663_vm0, %v1664_v13  ;;  %v1558_v42 = vld [vmem:[#allocation7 + $0x38] sm:$0xff]  }
  0xf7   :  { %1486 = vmatprep.subr.bf16.mxu0 %v1662_v1 }
  0xf8   :  { %1434 = vmatpush3.bf16.msra.mxu1 %v1873_v43  ;;  %v921_v43 = vpack.c.b16 %v1909_v8, %v1909_v8 }
  0xf9   :  { %1367 = vmatprep.subr.bf16.mxu1 %v1664_v13 }
  0xfa   :  { %1488 = vmatpush3.bf16.msra.mxu0 %v1875_v32 }
  0xfb   :  { %1225 = vmatmul.mubr.f32.vlgmr.msra.gmra.mrb[0].mxu1 %v1906_v2  ;;  %1489 = vmatprep.subr.bf16.mxu0 %v1662_v1 }
  0xfc   :  { %1368 = vmatpush3.bf16.msra.mxu1 %v1551_v34  ;;  %1383 = vmatprep.mubr.msk.bf16.mxu1 %vm1663_vm0, %v1664_v13 }
  0xfd   :  { %1369 = vmatprep.subr.bf16.mxu1 %v1664_v13 }
  0xfe   :  { %1491 = vmatpush3.bf16.msra.mxu0 %v1877_v46 }
  0xff   :  { %1492 = vmatprep.subr.bf16.mxu0 %v1662_v1 }
 0x100   :  { %1370 = vmatpush3.bf16.msra.mxu1 %v1552_v31 }
 0x101   :  { %1371 = vmatprep.subr.bf16.mxu1 %v1664_v13 }
 0x102   :  { %1494 = vmatpush3.bf16.msra.mxu0 %v1879_v47 }
 0x103   :  { %1495 = vmatprep.subr.bf16.mxu0 %v1662_v1 }
 0x104   :  { %1372 = vmatpush3.bf16.msra.mxu1 %v1553_v54 }
 0x105   :  { %1373 = vmatprep.subr.bf16.mxu1 %v1664_v13 }
 0x106   :  { %1497 = vmatpush3.bf16.msra.mxu0 %v1881_v48 }
 0x107   :  { %1498 = vmatprep.subr.bf16.mxu0 %v1662_v1 }
 0x108   :  { %1374 = vmatpush3.bf16.msra.mxu1 %v1554_v62 }
 0x109   :  { %1375 = vmatprep.subr.bf16.mxu1 %v1664_v13 }
 0x10a   :  { %1500 = vmatpush3.bf16.msra.mxu0 %v1883_v22 }
 0x10b   :  { %1501 = vmatprep.subr.bf16.mxu0 %v1662_v1 }
 0x10c   :  { %1376 = vmatpush3.bf16.msra.mxu1 %v1555_v9 }
 0x10d   :  { %1377 = vmatprep.subr.bf16.mxu1 %v1664_v13 }
 0x10e   :  { %1503 = vmatpush3.bf16.msra.mxu0 %v1885_v23 }
 0x10f   :  { %1504 = vmatprep.subr.bf16.mxu0 %v1662_v1 }
 0x110   :  { %1378 = vmatpush3.bf16.msra.mxu1 %v1556_v20 }
 0x111   :  { %1379 = vmatprep.subr.bf16.mxu1 %v1664_v13 }
 0x112   :  { %1506 = vmatpush3.bf16.msra.mxu0 %v1887_v29 }
 0x113   :  { %1507 = vmatprep.subr.bf16.mxu0 %v1662_v1 }
 0x114   :  { %1380 = vmatpush3.bf16.msra.mxu1 %v1557_v36 }
 0x115   :  { %1330 = vmatmul.mubr.f32.vlgmr.msra.gmra.mrb[0].mxu0 %v1906_v2  ;;  %1381 = vmatprep.subr.bf16.mxu1 %v1664_v13 }
 0x116   :  { %1509 = vmatpush3.bf16.msra.mxu0 %v1733_v33  ;;  %1364 = vmatprep.mubr.msk.f32.mxu0 %vm1663_vm0, %v1664_v13 }
 0x117   :  { %1510 = vmatprep.subr.bf16.mxu0 %v1662_v1 }
 0x118   :  { %1382 = vmatpush3.bf16.msra.mxu1 %v1558_v42 }
 0x11a   :  { %1512 = vmatpush3.bf16.msra.mxu0 %v1742_v40 }
 0x11b   :  { %1384 = vmatmul.mubr.bf16.vlgmr.msra.gmra.mrb[4].mxu1 %v921_v43  ;;  %1513 = vmatprep.subr.bf16.mxu0 %v1662_v1 }
 0x11e   :  { %1515 = vmatpush3.bf16.msra.mxu0 %v1751_v49 }
 0x11f   :  { %1516 = vmatprep.subr.bf16.mxu0 %v1662_v1 }
 0x122   :  { %1518 = vmatpush3.bf16.msra.mxu0 %v1760_v56 }
 0x123   :  { %1519 = vmatprep.subr.bf16.mxu0 %v1662_v1 }
 0x126   :  { %1521 = vmatpush3.bf16.msra.mxu0 %v1771_v3 }
 0x127   :  { %1522 = vmatprep.subr.bf16.mxu0 %v1662_v1 }
 0x12a   :  { %1524 = vmatpush3.bf16.msra.mxu0 %v1792_v15 }
 0x12b   :  { %1525 = vmatprep.subr.bf16.mxu0 %v1662_v1 }
 0x12e   :  { %1527 = vmatpush3.bf16.msra.mxu0 %v1811_v24 }
 0x12f   :  { %1528 = vmatprep.subr.bf16.mxu0 %v1662_v1 }
 0x132   :  { %1530 = vmatpush3.bf16.msra.mxu0 %v1824_v41 }
 0x135   :  { %1365 = vmatmul.mubr.f32.vlgmr.msra.gmra.mrb[0].mxu0 %v1906_v2 }
 0x1ce   :  { %v487_v33 = vpop.f32.mrb[0].mxu1 }
 0x1cf   :  { %v1226_v40 = vpop.f32.mrb[1].mxu1 }
 0x1ee   :  { %v1005_v49 = vpop.f32.mrb[4].mxu1 }
 0x1ef   :  { %v1385_v56 = vpop.f32.mrb[5].mxu1  ;;  %1559 = vrcp.f32 %v1005_v49 }
 0x1f0   :  { %v1008_v13 = vpop.f32.mrb[6].mxu1 }
 0x1f1   :  { %v1386_v3 = vpop.f32.mrb[7].mxu1 }
 0x1f9   :  { %v1560_v47 = vpop.eup %1559 }
 0x208   :  { %v886_v32 = vpop.f32.mrb[0].mxu0 }
 0x209   :  { %v1531_v15 = vadd.f32 %v886_v32, %v487_v33  ;;  %v1366_v46 = vpop.f32.mrb[1].mxu0 }
 0x20b   :  { %v1012_v24 = vmul.f32 %v1560_v47, %v1531_v15 }
 0x20d   :  { %1013 = vst [vmem:[#allocation8] sm:$0xff] %v1012_v24 }
 0x20e   :  { %1638 = shalt.err (!%p1635_p0)
}
 0x20f   :  { %s1639_s27 = scalar_lea.hbm %s2011_s3, 128 }
 0x210   :  { %p1640_p1 = scmp.ne.s32.totalorder %s2011_s3, %s1639_s27  ;;  %p1643_p2 = scmp.lt.u32.totalorder %s1639_s27, %s2011_s3 }
 0x212   :  { %p1645_p3 = pnand %p1643_p2, %p1640_p1 }
 0x214   :  { %1648 = shalt.err (!%p1645_p3)
}
 0x215   :  { %1023 = dma.vmem_to_hbm [thread:$0]  %s1021_s23, 128, %s2011_s3, [#allocation4]  }
 0x216   :  { %1653 = dma.done.wait [#allocation4], 128  }
 0x217   :  { %1654 = vsyncadd [#allocation4], 4294967168 }
 0x218   :  { %1027 = vsyncpa [#allocation3], 1 }
 0x219   :  { %1028 = vsyncpa [#allocation6], 1 }
 0x21a   :  { %1029 = vsyncpa [#allocation4], 1 }

// kernel: tpu_custom_call.1
= control target key start
LH: loop header
LB: loop body
LE: loop exit
PB: predicated region body
PF: predicated region fallthrough
CT: control target
= control target key end

     0   :  { %8 = vsyncpa [#allocation3], 0  ;;  %s2008_s0 = inlined_call_operand.hbm [shape: s32[8,8], index: 0, kind: input, shape index: {}]   ;;  %s2009_s1 = inlined_call_operand.hbm [shape: f32[128,128], index: 1, kind: input, shape index: {}]   ;;  %s2010_s2 = inlined_call_operand.hbm [shape: bf16[128,128], index: 2, kind: input, shape index: {}]   ;;  %s2011_s3 = inlined_call_operand.hbm [shape: f32[8,128], index: 3, kind: output, shape index: {}]  }
   0x1   :  { %9 = vsyncpa [#allocation6], 0 }
   0x2   :  { %10 = vsyncpa [#allocation4], 0  ;;  %s1655_s12 = smov [#allocation5]   ;;  %s1561_s16 = scalar_lea.hbm %s2009_s1, 2048 }
   0x3   :  { %s26_s13 = sshll.u32 %s1655_s12, 4  ;;  %p1562_p0 = scmp.ne.s32.totalorder %s2009_s1, %s1561_s16  ;;  %s27_s13 = int_to_ptr.vmem [resolvable:$true] %s26_s13 }
   0x4   :  { %p1565_p1 = scmp.lt.u32.totalorder %s1561_s16, %s2009_s1 }
   0x6   :  { %p1567_p2 = pnand %p1565_p1, %p1562_p0 }
   0x8   :  { %1570 = shalt.err (!%p1567_p2)
}
   0x9   :  { %s1571_s21 = scalar_lea.vmem %s27_s13, 2048  ;;  %p1576_p4 = scmp.lt.s32.totalorder %s27_s13, %s27_s13 }
   0xa   :  { %p1572_p3 = scmp.ne.s32.totalorder %s27_s13, %s1571_s21  ;;  %p1577_p5 = scmp.lt.s32.totalorder %s1571_s21, %s1571_s21 }
   0xc   :  { %p1578_p6 = por %p1577_p5, %p1576_p4 }
   0xe   :  { %p1579_p7 = pnand %p1578_p6, %p1572_p3 }
  0x10   :  { %1582 = shalt.err (!%p1579_p7)
}
  0x11   :  { %s1656_s22 = smov 128   ;;  %s1657_s23 = smov 8  }
  0x12   :  { %32 = dma.hbm_to_vmem [thread:$0]  %s2009_s1, 2048, %s27_s13, [#allocation6], %s1656_s22, %s1656_s22, %s1657_s23  }
  0x13   :  { %s1658_s26 = smov [#allocation2]   ;;  %s1659_s28 = smov [#allocation7]  }
  0x14   :  { %s17_s27 = sshll.u32 %s1658_s26, 4  ;;  %s38_s29 = sshll.u32 %s1659_s28, 4  ;;  %s18_s27 = int_to_ptr.vmem [resolvable:$true] %s17_s27  ;;  %s39_s29 = int_to_ptr.vmem [resolvable:$true] %s38_s29 }
  0x15   :  { %s1583_s5 = scalar_lea.hbm %s2008_s0, 128 }
  0x16   :  { %p1584_p8 = scmp.ne.s32.totalorder %s2008_s0, %s1583_s5  ;;  %p1587_p9 = scmp.lt.u32.totalorder %s1583_s5, %s2008_s0 }
  0x18   :  { %p1589_p10 = pnand %p1587_p9, %p1584_p8 }
  0x1a   :  { %1592 = shalt.err (!%p1589_p10)
}
  0x1b   :  { %s1593_s1 = scalar_lea.vmem %s18_s27, 128  ;;  %p1598_p12 = scmp.lt.s32.totalorder %s18_s27, %s18_s27 }
  0x1c   :  { %p1594_p11 = scmp.ne.s32.totalorder %s18_s27, %s1593_s1  ;;  %p1599_p13 = scmp.lt.s32.totalorder %s1593_s1, %s1593_s1 }
  0x1e   :  { %p1600_p0 = por %p1599_p13, %p1598_p12 }
  0x20   :  { %p1601_p1 = pnand %p1600_p0, %p1594_p11 }
  0x22   :  { %1604 = shalt.err (!%p1601_p1)
}
  0x23   :  { %20 = dma.hbm_to_vmem [thread:$0]  %s2008_s0, 128, %s18_s27, [#allocation3]  }
  0x24   :  { %s1605_s14 = scalar_lea.hbm %s2010_s2, 1024 }
  0x25   :  { %p1606_p2 = scmp.ne.s32.totalorder %s2010_s2, %s1605_s14  ;;  %p1609_p3 = scmp.lt.u32.totalorder %s1605_s14, %s2010_s2 }
  0x27   :  { %p1611_p4 = pnand %p1609_p3, %p1606_p2 }
  0x29   :  { %1614 = shalt.err (!%p1611_p4)
}
  0x2a   :  { %s1615_s19 = scalar_lea.vmem %s39_s29, 1024  ;;  %p1620_p6 = scmp.lt.s32.totalorder %s39_s29, %s39_s29 }
  0x2b   :  { %p1616_p5 = scmp.ne.s32.totalorder %s39_s29, %s1615_s19  ;;  %p1621_p7 = scmp.lt.s32.totalorder %s1615_s19, %s1615_s19 }
  0x2d   :  { %p1622_p8 = por %p1621_p7, %p1620_p6 }
  0x2f   :  { %p1623_p9 = pnand %p1622_p8, %p1616_p5 }
  0x31   :  { %1626 = shalt.err (!%p1623_p9)
}
  0x32   :  { %s1660_s0 = smov 64   ;;  %s1661_s20 = smov 4  }
  0x33   :  { %44 = dma.hbm_to_vmem [thread:$0]  %s2010_s2, 1024, %s39_s29, [#allocation6], %s1660_s0, %s1660_s0, %s1661_s20  }
  0x34   :  { %1649 = dma.done.wait [#allocation3], 128  }
  0x35   :  { %1650 = vsyncadd [#allocation3], 4294967168 }
  0x36   :  { %1651 = dma.done.wait [#allocation6], 3072  }
  0x37   :  { %1652 = vsyncadd [#allocation6], 4294964224  ;;  %v88_v0 = vlaneseq  ;;  %v1662_v1 = vmov 0.0|0.0   ;;  %v55_v7 = vld [vmem:[#allocation2] sm:$0xff]  ;;  %v56_v8 = vld [vmem:[#allocation5] sm:$0xff]  ;;  %vm1663_vm0 = vmmov 0  }
  0x38   :  { %1435 = vmatprep.subr.bf16.mxu0 %v1662_v1  ;;  %1387 = vmatprep.subr.bf16.mxu1 %v1662_v1  ;;  %v57_v9 = vld [vmem:[#allocation5 + $0x8] sm:$0xff]  ;;  %v58_v12 = vld [vmem:[#allocation5 + $0x10] sm:$0xff]  ;;  %v59_v13 = vld [vmem:[#allocation5 + $0x18] sm:$0xff]  ;;  %v250_v20 = vand.u32 4294901760, %v56_v8  ;;  %vm234_vm9 = vcmask 1041409   ;;  %vm236_vm10 = vcmask 1042434  }
  0x39   :  { %v91_v2 = vshrl.u32 %v88_v0, 7  ;;  %v60_v14 = vld [vmem:[#allocation5 + $0x20] sm:$0xff]  ;;  %v61_v19 = vld [vmem:[#allocation5 + $0x28] sm:$0xff]  ;;  %v253_v21 = vand.u32 4294901760, %v57_v9  ;;  %v256_v22 = vand.u32 4294901760, %v58_v12  ;;  %v259_v23 = vand.u32 4294901760, %v59_v13 }
  0x3a   :  { %v262_v25 = vand.u32 4294901760, %v60_v14  ;;  %v265_v26 = vand.u32 4294901760, %v61_v19  ;;  %v62_v27 = vld [vmem:[#allocation5 + $0x30] sm:$0xff]  ;;  %v63_v28 = vld [vmem:[#allocation5 + $0x38] sm:$0xff]  ;;  %v1725_v29 = vsub.f32 %v56_v8, %v250_v20  ;;  %v64_v44 = vld [vmem:[#allocation5 + $0x40] sm:$0xff]  ;;  %vm238_vm11 = vcmask 1043459  }
  0x3b   :  { %v106_v3 = vsub.s32 2, %v91_v2  ;;  %v92_v4 = vsub.s32 0, %v91_v2  ;;  %v113_v5 = vsub.s32 3, %v91_v2  ;;  %v99_v6 = vsub.s32 1, %v91_v2  ;;  %v65_v45 = vld [vmem:[#allocation5 + $0x48] sm:$0xff]  ;;  %v66_v54 = vld [vmem:[#allocation5 + $0x50] sm:$0xff] }
  0x3c   :  { %v127_v17 = vsub.s32 5, %v91_v2  ;;  %v120_v18 = vsub.s32 4, %v91_v2  ;;  %v141_v24 = vsub.s32 7, %v91_v2  ;;  %v1727_v30 = vsub.f32 %v57_v9, %v253_v21  ;;  %v67_v55 = vld [vmem:[#allocation5 + $0x58] sm:$0xff]  ;;  %v68_v58 = vld [vmem:[#allocation5 + $0x60] sm:$0xff]  ;;  %v69_v63 = vld [vmem:[#allocation5 + $0x68] sm:$0xff] }
  0x3d   :  { %v107_v10 = vrot.slane %v55_v7, %v106_v3  ;;  %v93_v11 = vrot.slane %v55_v7, %v92_v4  ;;  %v114_v15 = vrot.slane %v55_v7, %v113_v5  ;;  %v100_v16 = vrot.slane %v55_v7, %v99_v6  ;;  %v70_v8 = vld [vmem:[#allocation5 + $0x70] sm:$0xff]  ;;  %v71_v9 = vld [vmem:[#allocation5 + $0x78] sm:$0xff]  ;;  %s1665_s2 = smov [#allocation8]  }
  0x3e   :  { %v1729_v31 = vsub.f32 %v58_v12, %v256_v22  ;;  %v1731_v32 = vsub.f32 %v59_v13, %v259_v23  ;;  %v1733_v33 = vpack.c.bf16 %v253_v21, %v250_v20  ;;  %v128_v34 = vrot.slane %v55_v7, %v127_v17  ;;  %s1020_s23 = sshll.u32 %s1665_s2, 4  ;;  %s1021_s23 = int_to_ptr.vmem [resolvable:$true] %s1020_s23 }
  0x3f   :  { %109 = vbcast.lane.b32.xlu1 %v107_v10, 256  ;;  %95 = vbcast.lane.b32.xlu0 %v93_v11, 256  ;;  %v121_v35 = vrot.slane %v55_v7, %v120_v18  ;;  %v134_v36 = vsub.s32 6, %v91_v2  ;;  %v1436_v37 = vpack.c.bf16 %v1727_v30, %v1725_v29  ;;  %v1738_v38 = vsub.f32 %v60_v14, %v262_v25  ;;  %s1627_s24 = scalar_lea.vmem %s1021_s23, 128  ;;  %p1632_p11 = scmp.lt.s32.totalorder %s1021_s23, %s1021_s23 }
  0x40   :  { %1389 = vmatpush3.bf16.msra.mxu1 %v1733_v33  ;;  %v1740_v39 = vsub.f32 %v61_v19, %v265_v26  ;;  %v1742_v40 = vpack.c.bf16 %v259_v23, %v256_v22  ;;  %v268_v41 = vand.u32 4294901760, %v62_v27  ;;  %v1439_v42 = vpack.c.bf16 %v1731_v32, %v1729_v31  ;;  %p1628_p10 = scmp.ne.s32.totalorder %s1021_s23, %s1627_s24  ;;  %p1633_p12 = scmp.lt.s32.totalorder %s1627_s24, %s1627_s24 }
  0x41   :  { %1437 = vmatpush3.bf16.msra.mxu0 %v1436_v37  ;;  %1390 = vmatprep.subr.bf16.mxu1 %v1662_v1  ;;  %v271_v43 = vand.u32 4294901760, %v63_v28  ;;  %v142_v46 = vrot.slane %v55_v7, %v141_v24  ;;  %v135_v47 = vrot.slane %v55_v7, %v134_v36  ;;  %v1751_v49 = vpack.c.bf16 %v265_v26, %v262_v25 }
  0x42   :  { %1438 = vmatprep.subr.bf16.mxu0 %v1662_v1  ;;  %v1442_v48 = vpack.c.bf16 %v1740_v39, %v1738_v38  ;;  %v1753_v50 = vsub.f32 %v62_v27, %v268_v41  ;;  %v274_v52 = vand.u32 4294901760, %v64_v44  ;;  %v277_v53 = vand.u32 4294901760, %v65_v45  ;;  %p1634_p13 = por %p1633_p12, %p1632_p11 }
  0x43   :  { %116 = vbcast.lane.b32.xlu1 %v114_v15, 256  ;;  %102 = vbcast.lane.b32.xlu0 %v100_v16, 256  ;;  %v1755_v51 = vsub.f32 %v63_v28, %v271_v43  ;;  %v1760_v56 = vpack.c.bf16 %v271_v43, %v268_v41  ;;  %v280_v57 = vand.u32 4294901760, %v66_v54  ;;  %v283_v62 = vand.u32 4294901760, %v67_v55 }
  0x44   :  { %1392 = vmatpush3.bf16.msra.mxu1 %v1742_v40  ;;  %v1764_v60 = vsub.f32 %v64_v44, %v274_v52  ;;  %v1766_v61 = vsub.f32 %v65_v45, %v277_v53  ;;  %v286_v2 = vand.u32 4294901760, %v68_v58  ;;  %v1771_v3 = vpack.c.bf16 %v277_v53, %v274_v52  ;;  %p1635_p0 = pnand %p1634_p13, %p1628_p10 }
  0x45   :  { %1440 = vmatpush3.bf16.msra.mxu0 %v1439_v42  ;;  %1393 = vmatprep.subr.bf16.mxu1 %v1662_v1  ;;  %v1445_v59 = vpack.c.bf16 %v1755_v51, %v1753_v50  ;;  %v289_v4 = vand.u32 4294901760, %v69_v63  ;;  %v1775_v6 = vsub.f32 %v66_v54, %v280_v57  ;;  %v1777_v7 = vsub.f32 %v67_v55, %v283_v62 }
  0x46   :  { %1441 = vmatprep.subr.bf16.mxu0 %v1662_v1  ;;  %v1448_v5 = vpack.c.bf16 %v1766_v61, %v1764_v60  ;;  %v343_v10 = vand.u32 4294901760, %v1725_v29  ;;  %v350_v11 = vand.u32 4294901760, %v1727_v30  ;;  %v1783_v12 = vsub.f32 %v68_v58, %v286_v2 }
  0x47   :  { %130 = vbcast.lane.b32.xlu1 %v128_v34, 256  ;;  %123 = vbcast.lane.b32.xlu0 %v121_v35, 256  ;;  %v1664_v13 = vmov 0.0   ;;  %v1790_v14 = vsub.f32 %v69_v63, %v289_v4  ;;  %v1792_v15 = vpack.c.bf16 %v283_v62, %v280_v57  ;;  %v292_v16 = vand.u32 4294901760, %v70_v8 }
  0x48   :  { %1395 = vmatpush3.bf16.msra.mxu1 %v1751_v49  ;;  %1259 = vmatprep.mubr.msk.f32.mxu0 %vm1663_vm0, %v1664_v13  ;;  %v295_v17 = vand.u32 4294901760, %v71_v9  ;;  %v1451_v18 = vpack.c.bf16 %v1777_v7, %v1775_v6  ;;  %v344_v19 = vsub.f32 %v1725_v29, %v343_v10  ;;  %v351_v20 = vsub.f32 %v1727_v30, %v350_v11 }
  0x49   :  { %1443 = vmatpush3.bf16.msra.mxu0 %v1442_v48  ;;  %1396 = vmatprep.subr.bf16.mxu1 %v1662_v1  ;;  %v1454_v21 = vpack.c.bf16 %v1790_v14, %v1783_v12  ;;  %v1807_v22 = vsub.f32 %v70_v8, %v292_v16  ;;  %v1811_v24 = vpack.c.bf16 %v289_v4, %v286_v2  ;;  %v357_v27 = vand.u32 4294901760, %v1729_v31 }
  0x4a   :  { %1444 = vmatprep.subr.bf16.mxu0 %v1662_v1  ;;  %1189 = vmatprep.mubr.msk.f32.mxu1 %vm1663_vm0, %v1664_v13  ;;  %v1809_v23 = vsub.f32 %v71_v9, %v295_v17  ;;  %v345_v25 = vand.u32 4294901760, %v344_v19  ;;  %v352_v26 = vand.u32 4294901760, %v351_v20  ;;  %v364_v28 = vand.u32 4294901760, %v1731_v32 }
  0x4b   :  { %144 = vbcast.lane.b32.xlu1 %v142_v46, 256  ;;  %137 = vbcast.lane.b32.xlu0 %v135_v47, 256  ;;  %v358_v35 = vsub.f32 %v1729_v31, %v357_v27  ;;  %v1824_v41 = vpack.c.bf16 %v295_v17, %v292_v16  ;;  %v371_v44 = vand.u32 4294901760, %v1738_v38  ;;  %v378_v45 = vand.u32 4294901760, %v1740_v39 }
  0x4c   :  { %1398 = vmatpush3.bf16.msra.mxu1 %v1760_v56  ;;  %v1817_v34 = vpack.c.bf16 %v352_v26, %v345_v25  ;;  %v365_v36 = vsub.f32 %v1731_v32, %v364_v28  ;;  %v1457_v37 = vpack.c.bf16 %v1809_v23, %v1807_v22  ;;  %v385_v52 = vand.u32 4294901760, %v1753_v50 }
  0x4d   :  { %1446 = vmatpush3.bf16.msra.mxu0 %v1445_v59  ;;  %1399 = vmatprep.subr.bf16.mxu1 %v1662_v1  ;;  %v359_v42 = vand.u32 4294901760, %v358_v35  ;;  %v372_v32 = vsub.f32 %v1738_v38, %v371_v44  ;;  %v379_v46 = vsub.f32 %v1740_v39, %v378_v45  ;;  %v392_v53 = vand.u32 4294901760, %v1755_v51 }
  0x4e   :  { %1447 = vmatprep.subr.bf16.mxu0 %v1662_v1  ;;  %v366_v43 = vand.u32 4294901760, %v365_v36  ;;  %v386_v55 = vsub.f32 %v1753_v50, %v385_v52  ;;  %v399_v58 = vand.u32 4294901760, %v1764_v60  ;;  %v406_v59 = vand.u32 4294901760, %v1766_v61 }
  0x4f   :  { %v373_v47 = vand.u32 4294901760, %v372_v32  ;;  %v380_v48 = vand.u32 4294901760, %v379_v46  ;;  %v393_v38 = vsub.f32 %v1755_v51, %v392_v53  ;;  %v413_v8 = vand.u32 4294901760, %v1775_v6 }
  0x50   :  { %1401 = vmatpush3.bf16.msra.mxu1 %v1771_v3  ;;  %v1830_v31 = vpack.c.bf16 %v366_v43, %v359_v42  ;;  %v387_v39 = vand.u32 4294901760, %v386_v55  ;;  %v400_v63 = vsub.f32 %v1764_v60, %v399_v58  ;;  %v407_v2 = vsub.f32 %v1766_v61, %v406_v59 }
  0x51   :  { %1449 = vmatpush3.bf16.msra.mxu0 %v1448_v5  ;;  %1402 = vmatprep.subr.bf16.mxu1 %v1662_v1  ;;  %v1839_v54 = vpack.c.bf16 %v380_v48, %v373_v47  ;;  %v394_v57 = vand.u32 4294901760, %v393_v38  ;;  %v420_v50 = vand.u32 4294901760, %v1777_v7  ;;  %v414_v51 = vsub.f32 %v1775_v6, %v413_v8 }
  0x52   :  { %1450 = vmatprep.subr.bf16.mxu0 %v1662_v1  ;;  %v401_v4 = vand.u32 4294901760, %v400_v63  ;;  %v408_v5 = vand.u32 4294901760, %v407_v2  ;;  %v427_v19 = vand.u32 4294901760, %v1783_v12  ;;  %v434_v60 = vand.u32 4294901760, %v1790_v14 }
  0x53   :  { %v1845_v62 = vpack.c.bf16 %v394_v57, %v387_v39  ;;  %v421_v16 = vsub.f32 %v1777_v7, %v420_v50  ;;  %v415_v17 = vand.u32 4294901760, %v414_v51  ;;  %v441_v35 = vand.u32 4294901760, %v1807_v22 }
  0x54   :  { %1404 = vmatpush3.bf16.msra.mxu1 %v1792_v15  ;;  %v1851_v9 = vpack.c.bf16 %v408_v5, %v401_v4  ;;  %v428_v61 = vsub.f32 %v1783_v12, %v427_v19  ;;  %v448_v6 = vand.u32 4294901760, %v1809_v23  ;;  %v1871_v42 = vpack.c.bf16 %v350_v11, %v343_v10 }
  0x55   :  { %1452 = vmatpush3.bf16.msra.mxu0 %v1451_v18  ;;  %1405 = vmatprep.subr.bf16.mxu1 %v1662_v1  ;;  %v422_v18 = vand.u32 4294901760, %v421_v16  ;;  %v442_v7 = vsub.f32 %v1807_v22, %v441_v35  ;;  %v1875_v32 = vpack.c.bf16 %v364_v28, %v357_v27  ;;  %v1877_v46 = vpack.c.bf16 %v378_v45, %v371_v44 }
  0x56   :  { %1453 = vmatprep.subr.bf16.mxu0 %v1662_v1  ;;  %v429_v25 = vand.u32 4294901760, %v428_v61  ;;  %v1879_v47 = vpack.c.bf16 %v392_v53, %v385_v52  ;;  %v1881_v48 = vpack.c.bf16 %v406_v59, %v399_v58  ;;  %v1883_v22 = vpack.c.bf16 %v420_v50, %v413_v8 }
  0x57   :  { %v1857_v20 = vpack.c.bf16 %v422_v18, %v415_v17  ;;  %v443_v12 = vand.u32 4294901760, %v442_v7  ;;  %v1887_v29 = vpack.c.bf16 %v448_v6, %v441_v35  ;;  %v89_v30 = vand.u32 127, %v88_v0 }
  0x58   :  { %1407 = vmatpush3.bf16.msra.mxu1 %v1811_v24  ;;  %vm240_vm12 = vcmask 1044484   ;;  %vm242_vm13 = vcmask 1045509   ;;  %vm244_vm14 = vcmask 1046534   ;;  %vm246_vm15 = vcmask 1047559  }
  0x59   :  { %1455 = vmatpush3.bf16.msra.mxu0 %v1454_v21  ;;  %1408 = vmatprep.subr.bf16.mxu1 %v1662_v1  ;;  %v435_v21 = vsub.f32 %v1790_v14, %v434_v60 }
  0x5a   :  { %1456 = vmatprep.subr.bf16.mxu0 %v1662_v1 }
  0x5b   :  { %v436_v26 = vand.u32 4294901760, %v435_v21 }
  0x5c   :  { %1410 = vmatpush3.bf16.msra.mxu1 %v1824_v41 }
  0x5d   :  { %1458 = vmatpush3.bf16.msra.mxu0 %v1457_v37  ;;  %1411 = vmatprep.subr.bf16.mxu1 %v1662_v1  ;;  %v1863_v36 = vpack.c.bf16 %v436_v26, %v429_v25  ;;  %v449_v37 = vsub.f32 %v1809_v23, %v448_v6  ;;  %v1885_v23 = vpack.c.bf16 %v434_v60, %v427_v19 }
  0x5e   :  { %1459 = vmatprep.subr.bf16.mxu0 %v1662_v1 }
  0x5f   :  { %v450_v14 = vand.u32 4294901760, %v449_v37 }
  0x61   :  { %v1873_v43 = vpack.c.bf16 %v450_v14, %v443_v12 }
  0xb1   :  { %v110_v10 = vpop.permute.xlu1 %109  ;;  %v96_v11 = vpop.permute.xlu0 %95 }
  0xb2   :  { %vm148_vm1 = vcmp.eq.s32.totalorder %v110_v10, %v89_v30  ;;  %vm146_vm2 = vcmp.eq.s32.totalorder %v96_v11, %v89_v30 }
  0xb3   :  { %v1032_v27 = vsel %vm148_vm1, 1.0, %v1664_v13  ;;  %v1030_v28 = vsel %vm146_vm2, 1.0, %v1664_v13 }
  0xb4   :  { %v182_v44 = vrot.slane %v1032_v27, 4  ;;  %v170_v45 = vrot.slane %v1030_v28, 4 }
  0xb5   :  { %v117_v52 = vpop.permute.xlu1 %116  ;;  %v103_v53 = vpop.permute.xlu0 %102 }
  0xb6   :  { %v183_v55 = vadd.f32 %v1032_v27, %v182_v44  ;;  %v171_v38 = vadd.f32 %v1030_v28, %v170_v45  ;;  %vm149_vm3 = vcmp.eq.s32.totalorder %v117_v52, %v89_v30  ;;  %vm147_vm4 = vcmp.eq.s32.totalorder %v103_v53, %v89_v30 }
  0xb7   :  { %v1033_v39 = vsel %vm149_vm3, 1.0, %v1664_v13  ;;  %v1031_v0 = vsel %vm147_vm4, 1.0, %v1664_v13 }
  0xb8   :  { %v184_v57 = vrot.slane %v183_v55, 2  ;;  %v172_v58 = vrot.slane %v171_v38, 2  ;;  %v188_v59 = vrot.slane %v1033_v39, 4  ;;  %v176_v63 = vrot.slane %v1031_v0, 4 }
  0xb9   :  { %v131_v2 = vpop.permute.xlu1 %130  ;;  %v124_v4 = vpop.permute.xlu0 %123 }
  0xba   :  { %v185_v5 = vadd.f32 %v184_v57, %v183_v55  ;;  %v173_v8 = vadd.f32 %v172_v58, %v171_v38  ;;  %v189_v50 = vadd.f32 %v1033_v39, %v188_v59  ;;  %v177_v51 = vadd.f32 %v1031_v0, %v176_v63 }
  0xbb   :  { %vm151_vm5 = vcmp.eq.s32.totalorder %v131_v2, %v89_v30  ;;  %vm150_vm6 = vcmp.eq.s32.totalorder %v124_v4, %v89_v30 }
  0xbc   :  { %v186_v16 = vrot.slane %v185_v5, 1  ;;  %v174_v17 = vrot.slane %v173_v8, 1  ;;  %v190_v18 = vrot.slane %v189_v50, 2  ;;  %v178_v19 = vrot.slane %v177_v51, 2 }
  0xbd   :  { %v1035_v60 = vsel %vm151_vm5, 1.0, %v1664_v13  ;;  %v1034_v61 = vsel %vm150_vm6, 1.0, %v1664_v13  ;;  %v145_v21 = vpop.permute.xlu1 %144  ;;  %v138_v25 = vpop.permute.xlu0 %137 }
  0xbe   :  { %v187_v26 = vadd.f32 %v186_v16, %v185_v5  ;;  %v175_v35 = vadd.f32 %v174_v17, %v173_v8  ;;  %v191_v6 = vadd.f32 %v190_v18, %v189_v50  ;;  %v179_v7 = vadd.f32 %v178_v19, %v177_v51 }
  0xbf   :  { %v200_v37 = vrot.slane %v1035_v60, 4  ;;  %v194_v12 = vrot.slane %v1034_v61, 4  ;;  %vm153_vm7 = vcmp.eq.s32.totalorder %v145_v21, %v89_v30  ;;  %vm152_vm8 = vcmp.eq.s32.totalorder %v138_v25, %v89_v30 }
  0xc0   :  { %v192_v14 = vrot.slane %v191_v6, 1  ;;  %v180_v10 = vrot.slane %v179_v7, 1  ;;  %v1037_v28 = vsel %vm153_vm7, 1.0, %v1664_v13  ;;  %v1036_v44 = vsel %vm152_vm8, 1.0, %v1664_v13 }
  0xc1   :  { %v201_v11 = vadd.f32 %v1035_v60, %v200_v37  ;;  %v195_v27 = vadd.f32 %v1034_v61, %v194_v12  ;;  %v892_v45 = vpack.c.bf16 %v187_v26, %v187_v26  ;;  %v890_v52 = vpack.c.bf16 %v175_v35, %v175_v35 }
  0xc2   :  { %v193_v53 = vadd.f32 %v192_v14, %v191_v6  ;;  %v181_v55 = vadd.f32 %v180_v10, %v179_v7  ;;  %v212_v0 = vrot.slane %v1037_v28, 4  ;;  %v206_v57 = vrot.slane %v1036_v44, 4 }
  0xc3   :  { %v202_v38 = vrot.slane %v201_v11, 2  ;;  %v196_v39 = vrot.slane %v195_v27, 2  ;;  %v906_v8 = vunpack.c.l.b16 %v890_v52  ;;  %v908_v16 = vunpack.c.l.b16 %v892_v45 }
  0xc4   :  { %v893_v58 = vpack.c.bf16 %v193_v53, %v193_v53  ;;  %v235_v30 = vsel %vm234_vm9, %v181_v55, %v175_v35  ;;  %v891_v59 = vpack.c.bf16 %v181_v55, %v181_v55  ;;  %v213_v5 = vadd.f32 %v1037_v28, %v212_v0 }
  0xc5   :  { %v237_v63 = vsel %vm236_vm10, %v187_v26, %v235_v30  ;;  %v203_v2 = vadd.f32 %v202_v38, %v201_v11  ;;  %v197_v4 = vadd.f32 %v196_v39, %v195_v27  ;;  %v207_v51 = vadd.f32 %v1036_v44, %v206_v57 }
  0xc6   :  { %v907_v50 = vunpack.c.l.b16 %v891_v59  ;;  %v214_v19 = vrot.slane %v213_v5, 2  ;;  %v909_v60 = vunpack.c.l.b16 %v893_v58  ;;  %v239_v21 = vsel %vm238_vm11, %v193_v53, %v237_v63 }
  0xc7   :  { %v204_v17 = vrot.slane %v203_v2, 1  ;;  %v198_v18 = vrot.slane %v197_v4, 1  ;;  %v208_v25 = vrot.slane %v207_v51, 2 }
  0xc8   :  { %v914_v61 = vsel %vm234_vm9, %v907_v50, %v906_v8  ;;  %v215_v7 = vadd.f32 %v214_v19, %v213_v5 }
  0xc9   :  { %v915_v35 = vsel %vm236_vm10, %v908_v16, %v914_v61  ;;  %v205_v26 = vadd.f32 %v204_v17, %v203_v2  ;;  %v199_v6 = vadd.f32 %v198_v18, %v197_v4  ;;  %v209_v12 = vadd.f32 %v208_v25, %v207_v51 }
  0xca   :  { %v916_v37 = vsel %vm238_vm11, %v909_v60, %v915_v35  ;;  %v216_v11 = vrot.slane %v215_v7, 1 }
  0xcb   :  { %v895_v14 = vpack.c.bf16 %v205_v26, %v205_v26  ;;  %v894_v10 = vpack.c.bf16 %v199_v6, %v199_v6  ;;  %v241_v27 = vsel %vm240_vm12, %v199_v6, %v239_v21  ;;  %v210_v28 = vrot.slane %v209_v12, 1 }
  0xcc   :  { %v217_v52 = vadd.f32 %v216_v11, %v215_v7  ;;  %v243_v39 = vsel %vm242_vm13, %v205_v26, %v241_v27 }
  0xcd   :  { %v911_v44 = vunpack.c.l.b16 %v895_v14  ;;  %v910_v45 = vunpack.c.l.b16 %v894_v10  ;;  %v211_v53 = vadd.f32 %v210_v28, %v209_v12 }
  0xce   :  { %v897_v38 = vpack.c.bf16 %v217_v52, %v217_v52 }
  0xcf   :  { %v917_v55 = vsel %vm240_vm12, %v910_v45, %v916_v37  ;;  %v896_v0 = vpack.c.bf16 %v211_v53, %v211_v53  ;;  %v245_v57 = vsel %vm244_vm14, %v211_v53, %v243_v39 }
  0xd0   :  { %v918_v58 = vsel %vm242_vm13, %v911_v44, %v917_v55  ;;  %v913_v30 = vunpack.c.l.b16 %v897_v38  ;;  %v247_v59 = vsel %vm246_vm15, %v217_v52, %v245_v57 }
  0xd1   :  { %v912_v63 = vunpack.c.l.b16 %v896_v0  ;;  %v1906_v2 = vand.u32 4294901760, %v247_v59 }
  0xd3   :  { %v331_v4 = vsub.f32 %v247_v59, %v1906_v2  ;;  %v919_v5 = vsel %vm244_vm14, %v912_v63, %v918_v58 }
  0xd4   :  { %v1909_v8 = vsel %vm246_vm15, %v913_v30, %v919_v5 }
  0xd5   :  { %1260 = vmatmul.mubr.f32.vlgmr.msra.gmra.mrb[0].mxu0 %v331_v4  ;;  %v332_v50 = vand.u32 4294901760, %v331_v4 }
  0xd6   :  { %1461 = vmatpush3.bf16.msra.mxu0 %v1733_v33  ;;  %1294 = vmatprep.mubr.msk.f32.mxu0 %vm1663_vm0, %v1664_v13 }
  0xd7   :  { %1462 = vmatprep.subr.bf16.mxu0 %v1662_v1  ;;  %v333_v51 = vsub.f32 %v331_v4, %v332_v50 }
  0xd9   :  { %v334_v16 = vand.u32 4294901760, %v333_v51 }
  0xda   :  { %1464 = vmatpush3.bf16.msra.mxu0 %v1742_v40 }
  0xdb   :  { %1190 = vmatmul.mubr.f32.vlgmr.msra.gmra.mrb[0].mxu1 %v334_v16  ;;  %1465 = vmatprep.subr.bf16.mxu0 %v1662_v1 }
  0xdc   :  { %1413 = vmatpush3.bf16.msra.mxu1 %v1817_v34  ;;  %1224 = vmatprep.mubr.msk.f32.mxu1 %vm1663_vm0, %v1664_v13  ;;  %v1551_v34 = vld [vmem:[#allocation7] sm:$0xff]  }
  0xdd   :  { %1414 = vmatprep.subr.bf16.mxu1 %v1662_v1 }
  0xde   :  { %1467 = vmatpush3.bf16.msra.mxu0 %v1751_v49 }
  0xdf   :  { %1468 = vmatprep.subr.bf16.mxu0 %v1662_v1 }
  0xe0   :  { %1416 = vmatpush3.bf16.msra.mxu1 %v1830_v31  ;;  %v1552_v31 = vld [vmem:[#allocation7 + $0x8] sm:$0xff]  }
  0xe1   :  { %1417 = vmatprep.subr.bf16.mxu1 %v1662_v1 }
  0xe2   :  { %1470 = vmatpush3.bf16.msra.mxu0 %v1760_v56 }
  0xe3   :  { %1471 = vmatprep.subr.bf16.mxu0 %v1662_v1 }
  0xe4   :  { %1419 = vmatpush3.bf16.msra.mxu1 %v1839_v54  ;;  %v1553_v54 = vld [vmem:[#allocation7 + $0x10] sm:$0xff]  }
  0xe5   :  { %1420 = vmatprep.subr.bf16.mxu1 %v1662_v1 }
  0xe6   :  { %1473 = vmatpush3.bf16.msra.mxu0 %v1771_v3 }
  0xe7   :  { %1474 = vmatprep.subr.bf16.mxu0 %v1662_v1 }
  0xe8   :  { %1422 = vmatpush3.bf16.msra.mxu1 %v1845_v62  ;;  %v1554_v62 = vld [vmem:[#allocation7 + $0x18] sm:$0xff]  }
  0xe9   :  { %1423 = vmatprep.subr.bf16.mxu1 %v1662_v1 }
  0xea   :  { %1476 = vmatpush3.bf16.msra.mxu0 %v1792_v15 }
  0xeb   :  { %1477 = vmatprep.subr.bf16.mxu0 %v1662_v1 }
  0xec   :  { %1425 = vmatpush3.bf16.msra.mxu1 %v1851_v9  ;;  %v1555_v9 = vld [vmem:[#allocation7 + $0x20] sm:$0xff]  }
  0xed   :  { %1426 = vmatprep.subr.bf16.mxu1 %v1662_v1 }
  0xee   :  { %1479 = vmatpush3.bf16.msra.mxu0 %v1811_v24 }
  0xef   :  { %1480 = vmatprep.subr.bf16.mxu0 %v1662_v1 }
  0xf0   :  { %1428 = vmatpush3.bf16.msra.mxu1 %v1857_v20  ;;  %v1556_v20 = vld [vmem:[#allocation7 + $0x28] sm:$0xff]  }
  0xf1   :  { %1429 = vmatprep.subr.bf16.mxu1 %v1662_v1 }
  0xf2   :  { %1482 = vmatpush3.bf16.msra.mxu0 %v1824_v41 }
  0xf3   :  { %1483 = vmatprep.subr.bf16.mxu0 %v1662_v1 }
  0xf4   :  { %1431 = vmatpush3.bf16.msra.mxu1 %v1863_v36  ;;  %v1557_v36 = vld [vmem:[#allocation7 + $0x30] sm:$0xff]  }
  0xf5   :  { %1295 = vmatmul.mubr.f32.vlgmr.msra.gmra.mrb[0].mxu0 %v332_v50  ;;  %1432 = vmatprep.subr.bf16.mxu1 %v1662_v1 }
  0xf6   :  { %1485 = vmatpush3.bf16.msra.mxu0 %v1871_v42  ;;  %1329 = vmatprep.mubr.msk.f32.mxu0 %vm1663_vm0, %v1664_v13  ;;  %v1558_v42 = vld [vmem:[#allocation7 + $0x38] sm:$0xff]  }
  0xf7   :  { %1486 = vmatprep.subr.bf16.mxu0 %v1662_v1 }
  0xf8   :  { %1434 = vmatpush3.bf16.msra.mxu1 %v1873_v43  ;;  %v921_v43 = vpack.c.b16 %v1909_v8, %v1909_v8 }
  0xf9   :  { %1367 = vmatprep.subr.bf16.mxu1 %v1664_v13 }
  0xfa   :  { %1488 = vmatpush3.bf16.msra.mxu0 %v1875_v32 }
  0xfb   :  { %1225 = vmatmul.mubr.f32.vlgmr.msra.gmra.mrb[0].mxu1 %v1906_v2  ;;  %1489 = vmatprep.subr.bf16.mxu0 %v1662_v1 }
  0xfc   :  { %1368 = vmatpush3.bf16.msra.mxu1 %v1551_v34  ;;  %1383 = vmatprep.mubr.msk.bf16.mxu1 %vm1663_vm0, %v1664_v13 }
  0xfd   :  { %1369 = vmatprep.subr.bf16.mxu1 %v1664_v13 }
  0xfe   :  { %1491 = vmatpush3.bf16.msra.mxu0 %v1877_v46 }
  0xff   :  { %1492 = vmatprep.subr.bf16.mxu0 %v1662_v1 }
 0x100   :  { %1370 = vmatpush3.bf16.msra.mxu1 %v1552_v31 }
 0x101   :  { %1371 = vmatprep.subr.bf16.mxu1 %v1664_v13 }
 0x102   :  { %1494 = vmatpush3.bf16.msra.mxu0 %v1879_v47 }
 0x103   :  { %1495 = vmatprep.subr.bf16.mxu0 %v1662_v1 }
 0x104   :  { %1372 = vmatpush3.bf16.msra.mxu1 %v1553_v54 }
 0x105   :  { %1373 = vmatprep.subr.bf16.mxu1 %v1664_v13 }
 0x106   :  { %1497 = vmatpush3.bf16.msra.mxu0 %v1881_v48 }
 0x107   :  { %1498 = vmatprep.subr.bf16.mxu0 %v1662_v1 }
 0x108   :  { %1374 = vmatpush3.bf16.msra.mxu1 %v1554_v62 }
 0x109   :  { %1375 = vmatprep.subr.bf16.mxu1 %v1664_v13 }
 0x10a   :  { %1500 = vmatpush3.bf16.msra.mxu0 %v1883_v22 }
 0x10b   :  { %1501 = vmatprep.subr.bf16.mxu0 %v1662_v1 }
 0x10c   :  { %1376 = vmatpush3.bf16.msra.mxu1 %v1555_v9 }
 0x10d   :  { %1377 = vmatprep.subr.bf16.mxu1 %v1664_v13 }
 0x10e   :  { %1503 = vmatpush3.bf16.msra.mxu0 %v1885_v23 }
 0x10f   :  { %1504 = vmatprep.subr.bf16.mxu0 %v1662_v1 }
 0x110   :  { %1378 = vmatpush3.bf16.msra.mxu1 %v1556_v20 }
 0x111   :  { %1379 = vmatprep.subr.bf16.mxu1 %v1664_v13 }
 0x112   :  { %1506 = vmatpush3.bf16.msra.mxu0 %v1887_v29 }
 0x113   :  { %1507 = vmatprep.subr.bf16.mxu0 %v1662_v1 }
 0x114   :  { %1380 = vmatpush3.bf16.msra.mxu1 %v1557_v36 }
 0x115   :  { %1330 = vmatmul.mubr.f32.vlgmr.msra.gmra.mrb[0].mxu0 %v1906_v2  ;;  %1381 = vmatprep.subr.bf16.mxu1 %v1664_v13 }
 0x116   :  { %1509 = vmatpush3.bf16.msra.mxu0 %v1733_v33  ;;  %1364 = vmatprep.mubr.msk.f32.mxu0 %vm1663_vm0, %v1664_v13 }
 0x117   :  { %1510 = vmatprep.subr.bf16.mxu0 %v1662_v1 }
 0x118   :  { %1382 = vmatpush3.bf16.msra.mxu1 %v1558_v42 }
 0x11a   :  { %1512 = vmatpush3.bf16.msra.mxu0 %v1742_v40 }
 0x11b   :  { %1384 = vmatmul.mubr.bf16.vlgmr.msra.gmra.mrb[4].mxu1 %v921_v43  ;;  %1513 = vmatprep.subr.bf16.mxu0 %v1662_v1 }
 0x11e   :  { %1515 = vmatpush3.bf16.msra.mxu0 %v1751_v49 }
 0x11f   :  { %1516 = vmatprep.subr.bf16.mxu0 %v1662_v1 }
 0x122   :  { %1518 = vmatpush3.bf16.msra.mxu0 %v1760_v56 }
 0x123   :  { %1519 = vmatprep.subr.bf16.mxu0 %v1662_v1 }
 0x126   :  { %1521 = vmatpush3.bf16.msra.mxu0 %v1771_v3 }
 0x127   :  { %1522 = vmatprep.subr.bf16.mxu0 %v1662_v1 }
 0x12a   :  { %1524 = vmatpush3.bf16.msra.mxu0 %v1792_v15 }
 0x12b   :  { %1525 = vmatprep.subr.bf16.mxu0 %v1662_v1 }
 0x12e   :  { %1527 = vmatpush3.bf16.msra.mxu0 %v1811_v24 }
 0x12f   :  { %1528 = vmatprep.subr.bf16.mxu0 %v1662_v1 }
 0x132   :  { %1530 = vmatpush3.bf16.msra.mxu0 %v1824_v41 }
 0x135   :  { %1365 = vmatmul.mubr.f32.vlgmr.msra.gmra.mrb[0].mxu0 %v1906_v2 }
 0x1ce   :  { %v487_v33 = vpop.f32.mrb[0].mxu1 }
 0x1cf   :  { %v1226_v40 = vpop.f32.mrb[1].mxu1 }
 0x1ee   :  { %v1005_v49 = vpop.f32.mrb[4].mxu1 }
 0x1ef   :  { %v1385_v56 = vpop.f32.mrb[5].mxu1  ;;  %1559 = vrcp.f32 %v1005_v49 }
 0x1f0   :  { %v1008_v13 = vpop.f32.mrb[6].mxu1 }
 0x1f1   :  { %v1386_v3 = vpop.f32.mrb[7].mxu1 }
 0x1f9   :  { %v1560_v47 = vpop.eup %1559 }
 0x208   :  { %v886_v32 = vpop.f32.mrb[0].mxu0 }
 0x209   :  { %v1531_v15 = vadd.f32 %v886_v32, %v487_v33  ;;  %v1366_v46 = vpop.f32.mrb[1].mxu0 }
 0x20b   :  { %v1012_v24 = vmul.f32 %v1560_v47, %v1531_v15 }
 0x20d   :  { %1013 = vst [vmem:[#allocation8] sm:$0xff] %v1012_v24 }
 0x20e   :  { %1638 = shalt.err (!%p1635_p0)
}
 0x20f   :  { %s1639_s27 = scalar_lea.hbm %s2011_s3, 128 }
 0x210   :  { %p1640_p1 = scmp.ne.s32.totalorder %s2011_s3, %s1639_s27  ;;  %p1643_p2 = scmp.lt.u32.totalorder %s1639_s27, %s2011_s3 }
 0x212   :  { %p1645_p3 = pnand %p1643_p2, %p1640_p1 }
 0x214   :  { %1648 = shalt.err (!%p1645_p3)
}
 0x215   :  { %1023 = dma.vmem_to_hbm [thread:$0]  %s1021_s23, 128, %s2011_s3, [#allocation4]  }
 0x216   :  { %1653 = dma.done.wait [#allocation4], 128  }
 0x217   :  { %1654 = vsyncadd [#allocation4], 4294967168 }
 0x218   :  { %1027 = vsyncpa [#allocation3], 1 }
 0x219   :  { %1028 = vsyncpa [#allocation6], 1 }
 0x21a   :  { %1029 = vsyncpa [#allocation4], 1 }

</bundles_post_ra>
